<compile_context>
chip_gen: v7x
topology: tpu7x:2x2x1
jax: 0.10.0
libtpu: 0.0.40
codegen_flags: <defaults>
</compile_context>

<pallas_src>
import jax
import jax.numpy as jnp
from jax.experimental import pallas as pl
from jax.experimental.pallas import tpu as pltpu

EPS = 1e-5


def _make_reduce_conv_kernel(C, H, W, HW):
    """Kernel 1: channel mean/max reduction + two dilated 3x3 convs."""
    # Static tap table for a 3x3 kernel with dilation 2 / padding 2:
    #   spatial offset (dh, dw) = (2*(kh-1), 2*(kw-1)); flat offset dh*W + dw.
    # shifted[p] = flat[p + off]  ==  roll(flat, shift=(-off) % HW)[p]
    taps = []
    for kh in range(3):
        for kw in range(3):
            dh, dw = 2 * (kh - 1), 2 * (kw - 1)
            taps.append((kh * 3 + kw, dh, dw, (-(dh * W + dw)) % HW))

    def kernel(x_ref, w1_ref, w2_ref, d2_ref, acc_sum, acc_max):
        c = pl.program_id(1)
        nc = pl.num_programs(1)

        xblk = x_ref[0]                                     # (c_blk, HW)
        part_sum = jnp.sum(xblk, axis=0, keepdims=True)     # (1, HW)
        part_max = jnp.max(xblk, axis=0, keepdims=True)     # (1, HW)

        @pl.when(c == 0)
        def _():
            acc_sum[...] = part_sum
            acc_max[...] = part_max

        @pl.when(c != 0)
        def _():
            acc_sum[...] = acc_sum[...] + part_sum
            acc_max[...] = jnp.maximum(acc_max[...], part_max)

        @pl.when(c == nc - 1)
        def _():
            avg = acc_sum[...] * (1.0 / C)                  # (1, HW)
            mx = acc_max[...]

            # Flat position -> (h, w) for the edge masks.  Use the float path
            # (exact for these ranges) instead of vector integer div.
            p = jax.lax.broadcasted_iota(jnp.int32, (1, HW), 1)
            hh = jnp.floor(p.astype(jnp.float32) / float(W)).astype(jnp.int32)
            ww = p - hh * W

            masks = []
            for _, dh, dw, _sh in taps:
                valid = ((hh + dh >= 0) & (hh + dh < H) &
                         (ww + dw >= 0) & (ww + dw < W))
                masks.append(valid)

            def shifted(v, shift):
                if shift == 0:
                    return v
                return pltpu.roll(v, shift=shift, axis=1)   # XLU lane rotate

            # dilated_conv_1: 2 channels (avg, max) -> 1 channel
            d1 = jnp.zeros((1, HW), jnp.float32)
            for (ti, dh, dw, sh), valid in zip(taps, masks):
                tap = (w1_ref[ti] * shifted(avg, sh)
                       + w1_ref[9 + ti] * shifted(mx, sh))
                if dh == 0 and dw == 0:
                    d1 = d1 + tap                            # center tap: no mask
                else:
                    d1 = d1 + jnp.where(valid, tap, 0.0)

            # dilated_conv_2: 1 -> 1 channel
            d2 = jnp.zeros((1, HW), jnp.float32)
            for (ti, dh, dw, sh), valid in zip(taps, masks):
                tap = w2_ref[ti] * shifted(d1, sh)
                if dh == 0 and dw == 0:
                    d2 = d2 + tap
                else:
                    d2 = d2 + jnp.where(valid, tap, 0.0)

            d2_ref[0] = d2                                   # un-normalized output

    return kernel


def _make_bn_kernel(count):
    """Kernel 2: fused batch statistics + normalization (BatchNorm2d(1))."""
    inv_count = 1.0 / count

    def kernel(d2_ref, gamma_ref, beta_ref, out_ref):
        d2 = d2_ref[...]
        s = jnp.sum(d2)
        sq = jnp.sum(d2 * d2)
        mean = s * inv_count
        var = jnp.maximum(sq * inv_count - mean * mean, 0.0)   # biased, clamped
        inv_std = jax.lax.rsqrt(var + EPS)
        out_ref[...] = (d2 - mean) * inv_std * gamma_ref[0] + beta_ref[0]

    return kernel


def spatial_attention(x, w1, w2, gamma, beta):
    """x: (N,C,H,W) f32. w1: (1,2,3,3), w2: (1,1,3,3). Returns (N,1,H,W)."""
    N, C, H, W = x.shape
    HW = H * W

    # Lane-dense layout: spatial dims flattened onto the lane axis.
    x_flat = x.reshape(N, C, HW)
    # Second-minor block dim must be 8-aligned or the full extent.
    c_blk = 8 if C % 8 == 0 else C
    num_c = C // c_blk

    d2 = pl.pallas_call(
        _make_reduce_conv_kernel(C, H, W, HW),
        grid=(N, num_c),
        in_specs=[
            pl.BlockSpec((1, c_blk, HW), lambda n, c: (n, c, 0)),        # x
            pl.BlockSpec(memory_space=pltpu.MemorySpace.SMEM),           # w1 (18,)
            pl.BlockSpec(memory_space=pltpu.MemorySpace.SMEM),           # w2 (9,)
        ],
        out_specs=pl.BlockSpec((1, 1, HW), lambda n, c: (n, 0, 0)),
        out_shape=jax.ShapeDtypeStruct((N, 1, HW), jnp.float32),
        scratch_shapes=[
            pltpu.VMEM((1, HW), jnp.float32),   # running channel sum
            pltpu.VMEM((1, HW), jnp.float32),   # running channel max
        ],
        compiler_params=pltpu.CompilerParams(
            dimension_semantics=("parallel", "arbitrary"),
            vmem_limit_bytes=32 * 1024 * 1024),
    )(x_flat, w1.reshape(-1), w2.reshape(-1))

    # Second (tiny) pass: global batch-norm statistics + normalization.
    # d2 is only N*H*W floats; for very large N*H*W this pass would be
    # gridded with partial-sum accumulators as well.
    out = pl.pallas_call(
        _make_bn_kernel(N * HW),
        in_specs=[
            pl.BlockSpec(memory_space=pltpu.MemorySpace.VMEM),           # d2
            pl.BlockSpec(memory_space=pltpu.MemorySpace.SMEM),           # gamma
            pl.BlockSpec(memory_space=pltpu.MemorySpace.SMEM),           # beta
        ],
        out_specs=pl.BlockSpec(memory_space=pltpu.MemorySpace.VMEM),
        out_shape=jax.ShapeDtypeStruct((N, 1, HW), jnp.float32),
    )(d2, gamma, beta)

    return out.reshape(N, 1, H, W)


def ref_forward(x, w1, w2, gamma, beta, eps=EPS):
    """Plain-JAX reference matching the PyTorch module forward."""
    avg = jnp.mean(x, axis=1, keepdims=True)
    mx = jnp.max(x, axis=1, keepdims=True)
    combined = jnp.concatenate([avg, mx], axis=1)

    def dconv(inp, w):
        return jax.lax.conv_general_dilated(
            inp, w, window_strides=(1, 1), padding=((2, 2), (2, 2)),
            rhs_dilation=(2, 2), dimension_numbers=("NCHW", "OIHW", "NCHW"))

    d1 = dconv(combined, w1)
    d2 = dconv(d1, w2)
    mean = jnp.mean(d2)
    var = jnp.mean((d2 - mean) ** 2)
    return (d2 - mean) / jnp.sqrt(var + eps) * gamma[0] + beta[0]


if __name__ == "__main__":
    key = jax.random.PRNGKey(0)
    kx, k1, k2 = jax.random.split(key, 3)

    N, C, H, W = 2, 4, 16, 16
    x = jax.random.normal(kx, (N, C, H, W), jnp.float32)

    # Deterministic synthetic weights (module __init__ shapes, no bias).
    w1 = jax.random.normal(k1, (1, 2, 3, 3), jnp.float32) * 0.2   # Conv2d(2->1)
    w2 = jax.random.normal(k2, (1, 1, 3, 3), jnp.float32) * 0.3   # Conv2d(1->1)
    gamma = jnp.ones((1,), jnp.float32)                           # bn1.weight
    beta = jnp.zeros((1,), jnp.float32)                           # bn1.bias

    out = spatial_attention(x, w1, w2, gamma, beta)
    out = jax.block_until_ready(out)

    ref = ref_forward(x, w1, w2, gamma, beta)
    assert out.shape == (N, 1, H, W), out.shape
    err = float(jnp.max(jnp.abs(out - ref)))
    assert jnp.allclose(out, ref, atol=1e-4, rtol=1e-4), err
    print("KERNEL_OK")
</pallas_src>

<mosaic_0001>
module attributes {stable_mosaic.version = 11 : i64} {
  func.func @kernel(%arg0: i32, %arg1: i32, %arg2: memref<1x4x256xf32, #tpu.memory_space<vmem>>, %arg3: memref<18xf32, #tpu.memory_space<smem>>, %arg4: memref<9xf32, #tpu.memory_space<smem>>, %arg5: memref<1x1x256xf32, #tpu.memory_space<vmem>>, %arg6: memref<1x256xf32, #tpu.memory_space<vmem>>, %arg7: memref<1x256xf32, #tpu.memory_space<vmem>>) attributes {dimension_semantics = [#tpu.dimension_semantics<parallel>, #tpu.dimension_semantics<arbitrary>], iteration_bounds = array<i64: 2, 1>, scalar_prefetch = 0 : i64, scratch_operands = 2 : i64, tpu.core_type = #tpu.core_type<tc>, window_params = [{transform_indices = @transform_0, window_bounds = array<i64: 1, 4, 256>}, {transform_indices = @transform_1, window_bounds = array<i64: 18>}, {transform_indices = @transform_2, window_bounds = array<i64: 9>}, {transform_indices = @transform_3, window_bounds = array<i64: 1, 1, 256>}]} {
    %c0 = arith.constant 0 : index
    %c0_0 = arith.constant 0 : index
    %c0_1 = arith.constant 0 : index
    %0 = vector.load %arg2[%c0, %c0_0, %c0_1] : memref<1x4x256xf32, #tpu.memory_space<vmem>>, vector<1x4x256xf32>
    %1 = vector.shape_cast %0 : vector<1x4x256xf32> to vector<4x256xf32>
    %cst = arith.constant dense<0.000000e+00> : vector<256xf32>
    %2 = vector.multi_reduction <add>, %1, %cst [0] : vector<4x256xf32> to vector<256xf32>
    %3 = vector.shape_cast %2 : vector<256xf32> to vector<1x256xf32>
    %cst_2 = arith.constant dense<0xFF800000> : vector<256xf32>
    %4 = vector.multi_reduction <maximumf>, %1, %cst_2 [0] : vector<4x256xf32> to vector<256xf32>
    %5 = vector.shape_cast %4 : vector<256xf32> to vector<1x256xf32>
    %c0_i32 = arith.constant 0 : i32
    %6 = arith.cmpi eq, %arg1, %c0_i32 : i32
    %7 = arith.extui %6 : i1 to i32
    %c0_i32_3 = arith.constant 0 : i32
    %8 = arith.cmpi ne, %7, %c0_i32_3 : i32
    scf.if %8 {
      %c0_8 = arith.constant 0 : index
      %c0_9 = arith.constant 0 : index
      %15 = vector.load %arg6[%c0_8, %c0_9] : memref<1x256xf32, #tpu.memory_space<vmem>>, vector<1x256xf32>
      tpu.vector_store %arg6[%c0_8, %c0_9], %3 {strides = array<i32>} : memref<1x256xf32, #tpu.memory_space<vmem>>, vector<1x256xf32>,
      %c0_10 = arith.constant 0 : index
      %c0_11 = arith.constant 0 : index
      %16 = vector.load %arg7[%c0_10, %c0_11] : memref<1x256xf32, #tpu.memory_space<vmem>>, vector<1x256xf32>
      tpu.vector_store %arg7[%c0_10, %c0_11], %5 {strides = array<i32>} : memref<1x256xf32, #tpu.memory_space<vmem>>, vector<1x256xf32>,
    } else {
    }
    %c0_i32_4 = arith.constant 0 : i32
    %9 = arith.cmpi ne, %arg1, %c0_i32_4 : i32
    %10 = arith.extui %9 : i1 to i32
    %c0_i32_5 = arith.constant 0 : i32
    %11 = arith.cmpi ne, %10, %c0_i32_5 : i32
    scf.if %11 {
      %c0_8 = arith.constant 0 : index
      %c0_9 = arith.constant 0 : index
      %15 = vector.load %arg6[%c0_8, %c0_9] : memref<1x256xf32, #tpu.memory_space<vmem>>, vector<1x256xf32>
      %16 = arith.addf %15, %3 : vector<1x256xf32>
      %c0_10 = arith.constant 0 : index
      %c0_11 = arith.constant 0 : index
      %17 = vector.load %arg6[%c0_10, %c0_11] : memref<1x256xf32, #tpu.memory_space<vmem>>, vector<1x256xf32>
      tpu.vector_store %arg6[%c0_10, %c0_11], %16 {strides = array<i32>} : memref<1x256xf32, #tpu.memory_space<vmem>>, vector<1x256xf32>,
      %c0_12 = arith.constant 0 : index
      %c0_13 = arith.constant 0 : index
      %18 = vector.load %arg7[%c0_12, %c0_13] : memref<1x256xf32, #tpu.memory_space<vmem>>, vector<1x256xf32>
      %19 = arith.maximumf %18, %5 : vector<1x256xf32>
      %c0_14 = arith.constant 0 : index
      %c0_15 = arith.constant 0 : index
      %20 = vector.load %arg7[%c0_14, %c0_15] : memref<1x256xf32, #tpu.memory_space<vmem>>, vector<1x256xf32>
      tpu.vector_store %arg7[%c0_14, %c0_15], %19 {strides = array<i32>} : memref<1x256xf32, #tpu.memory_space<vmem>>, vector<1x256xf32>,
    } else {
    }
    %c0_i32_6 = arith.constant 0 : i32
    %12 = arith.cmpi eq, %arg1, %c0_i32_6 : i32
    %13 = arith.extui %12 : i1 to i32
    %c0_i32_7 = arith.constant 0 : i32
    %14 = arith.cmpi ne, %13, %c0_i32_7 : i32
    scf.if %14 {
      %c0_8 = arith.constant 0 : index
      %c0_9 = arith.constant 0 : index
      %15 = vector.load %arg6[%c0_8, %c0_9] : memref<1x256xf32, #tpu.memory_space<vmem>>, vector<1x256xf32>
      %cst_10 = arith.constant 2.500000e-01 : f32
      %16 = vector.broadcast %cst_10 : f32 to vector<1x256xf32>
      %17 = arith.mulf %15, %16 : vector<1x256xf32>
      %c0_11 = arith.constant 0 : index
      %c0_12 = arith.constant 0 : index
      %18 = vector.load %arg7[%c0_11, %c0_12] : memref<1x256xf32, #tpu.memory_space<vmem>>, vector<1x256xf32>
      %19 = tpu.iota {dimensions = array<i32: 1>} : vector<1x256xi32>
      %20 = arith.sitofp %19 : vector<1x256xi32> to vector<1x256xf32>
      %cst_13 = arith.constant 1.600000e+01 : f32
      %21 = vector.broadcast %cst_13 : f32 to vector<1x256xf32>
      %22 = arith.divf %20, %21 : vector<1x256xf32>
      %23 = math.floor %22 : vector<1x256xf32>
      %24 = arith.fptosi %23 : vector<1x256xf32> to vector<1x256xi32>
      %c16_i32 = arith.constant 16 : i32
      %25 = vector.broadcast %c16_i32 : i32 to vector<1x256xi32>
      %26 = arith.muli %24, %25 : vector<1x256xi32>
      %27 = arith.subi %19, %26 : vector<1x256xi32>
      %c-2_i32 = arith.constant -2 : i32
      %28 = vector.broadcast %c-2_i32 : i32 to vector<1x256xi32>
      %29 = arith.addi %24, %28 : vector<1x256xi32>
      %c0_i32_14 = arith.constant 0 : i32
      %30 = vector.broadcast %c0_i32_14 : i32 to vector<1x256xi32>
      %31 = arith.cmpi sge, %29, %30 : vector<1x256xi32>
      %c-2_i32_15 = arith.constant -2 : i32
      %32 = vector.broadcast %c-2_i32_15 : i32 to vector<1x256xi32>
      %33 = arith.addi %24, %32 : vector<1x256xi32>
      %c16_i32_16 = arith.constant 16 : i32
      %34 = vector.broadcast %c16_i32_16 : i32 to vector<1x256xi32>
      %35 = arith.cmpi slt, %33, %34 : vector<1x256xi32>
      %36 = arith.andi %31, %35 : vector<1x256xi1>
      %c-2_i32_17 = arith.constant -2 : i32
      %37 = vector.broadcast %c-2_i32_17 : i32 to vector<1x256xi32>
      %38 = arith.addi %27, %37 : vector<1x256xi32>
      %c0_i32_18 = arith.constant 0 : i32
      %39 = vector.broadcast %c0_i32_18 : i32 to vector<1x256xi32>
      %40 = arith.cmpi sge, %38, %39 : vector<1x256xi32>
      %41 = arith.andi %36, %40 : vector<1x256xi1>
      %c-2_i32_19 = arith.constant -2 : i32
      %42 = vector.broadcast %c-2_i32_19 : i32 to vector<1x256xi32>
      %43 = arith.addi %27, %42 : vector<1x256xi32>
      %c16_i32_20 = arith.constant 16 : i32
      %44 = vector.broadcast %c16_i32_20 : i32 to vector<1x256xi32>
      %45 = arith.cmpi slt, %43, %44 : vector<1x256xi32>
      %46 = arith.andi %41, %45 : vector<1x256xi1>
      %c-2_i32_21 = arith.constant -2 : i32
      %47 = vector.broadcast %c-2_i32_21 : i32 to vector<1x256xi32>
      %48 = arith.addi %24, %47 : vector<1x256xi32>
      %c0_i32_22 = arith.constant 0 : i32
      %49 = vector.broadcast %c0_i32_22 : i32 to vector<1x256xi32>
      %50 = arith.cmpi sge, %48, %49 : vector<1x256xi32>
      %c-2_i32_23 = arith.constant -2 : i32
      %51 = vector.broadcast %c-2_i32_23 : i32 to vector<1x256xi32>
      %52 = arith.addi %24, %51 : vector<1x256xi32>
      %c16_i32_24 = arith.constant 16 : i32
      %53 = vector.broadcast %c16_i32_24 : i32 to vector<1x256xi32>
      %54 = arith.cmpi slt, %52, %53 : vector<1x256xi32>
      %55 = arith.andi %50, %54 : vector<1x256xi1>
      %c0_i32_25 = arith.constant 0 : i32
      %56 = vector.broadcast %c0_i32_25 : i32 to vector<1x256xi32>
      %57 = arith.addi %27, %56 : vector<1x256xi32>
      %c0_i32_26 = arith.constant 0 : i32
      %58 = vector.broadcast %c0_i32_26 : i32 to vector<1x256xi32>
      %59 = arith.cmpi sge, %57, %58 : vector<1x256xi32>
      %60 = arith.andi %55, %59 : vector<1x256xi1>
      %c0_i32_27 = arith.constant 0 : i32
      %61 = vector.broadcast %c0_i32_27 : i32 to vector<1x256xi32>
      %62 = arith.addi %27, %61 : vector<1x256xi32>
      %c16_i32_28 = arith.constant 16 : i32
      %63 = vector.broadcast %c16_i32_28 : i32 to vector<1x256xi32>
      %64 = arith.cmpi slt, %62, %63 : vector<1x256xi32>
      %65 = arith.andi %60, %64 : vector<1x256xi1>
      %c-2_i32_29 = arith.constant -2 : i32
      %66 = vector.broadcast %c-2_i32_29 : i32 to vector<1x256xi32>
      %67 = arith.addi %24, %66 : vector<1x256xi32>
      %c0_i32_30 = arith.constant 0 : i32
      %68 = vector.broadcast %c0_i32_30 : i32 to vector<1x256xi32>
      %69 = arith.cmpi sge, %67, %68 : vector<1x256xi32>
      %c-2_i32_31 = arith.constant -2 : i32
      %70 = vector.broadcast %c-2_i32_31 : i32 to vector<1x256xi32>
      %71 = arith.addi %24, %70 : vector<1x256xi32>
      %c16_i32_32 = arith.constant 16 : i32
      %72 = vector.broadcast %c16_i32_32 : i32 to vector<1x256xi32>
      %73 = arith.cmpi slt, %71, %72 : vector<1x256xi32>
      %74 = arith.andi %69, %73 : vector<1x256xi1>
      %c2_i32 = arith.constant 2 : i32
      %75 = vector.broadcast %c2_i32 : i32 to vector<1x256xi32>
      %76 = arith.addi %27, %75 : vector<1x256xi32>
      %c0_i32_33 = arith.constant 0 : i32
      %77 = vector.broadcast %c0_i32_33 : i32 to vector<1x256xi32>
      %78 = arith.cmpi sge, %76, %77 : vector<1x256xi32>
      %79 = arith.andi %74, %78 : vector<1x256xi1>
      %c2_i32_34 = arith.constant 2 : i32
      %80 = vector.broadcast %c2_i32_34 : i32 to vector<1x256xi32>
      %81 = arith.addi %27, %80 : vector<1x256xi32>
      %c16_i32_35 = arith.constant 16 : i32
      %82 = vector.broadcast %c16_i32_35 : i32 to vector<1x256xi32>
      %83 = arith.cmpi slt, %81, %82 : vector<1x256xi32>
      %84 = arith.andi %79, %83 : vector<1x256xi1>
      %c0_i32_36 = arith.constant 0 : i32
      %85 = vector.broadcast %c0_i32_36 : i32 to vector<1x256xi32>
      %86 = arith.addi %24, %85 : vector<1x256xi32>
      %c0_i32_37 = arith.constant 0 : i32
      %87 = vector.broadcast %c0_i32_37 : i32 to vector<1x256xi32>
      %88 = arith.cmpi sge, %86, %87 : vector<1x256xi32>
      %c0_i32_38 = arith.constant 0 : i32
      %89 = vector.broadcast %c0_i32_38 : i32 to vector<1x256xi32>
      %90 = arith.addi %24, %89 : vector<1x256xi32>
      %c16_i32_39 = arith.constant 16 : i32
      %91 = vector.broadcast %c16_i32_39 : i32 to vector<1x256xi32>
      %92 = arith.cmpi slt, %90, %91 : vector<1x256xi32>
      %93 = arith.andi %88, %92 : vector<1x256xi1>
      %c-2_i32_40 = arith.constant -2 : i32
      %94 = vector.broadcast %c-2_i32_40 : i32 to vector<1x256xi32>
      %95 = arith.addi %27, %94 : vector<1x256xi32>
      %c0_i32_41 = arith.constant 0 : i32
      %96 = vector.broadcast %c0_i32_41 : i32 to vector<1x256xi32>
      %97 = arith.cmpi sge, %95, %96 : vector<1x256xi32>
      %98 = arith.andi %93, %97 : vector<1x256xi1>
      %c-2_i32_42 = arith.constant -2 : i32
      %99 = vector.broadcast %c-2_i32_42 : i32 to vector<1x256xi32>
      %100 = arith.addi %27, %99 : vector<1x256xi32>
      %c16_i32_43 = arith.constant 16 : i32
      %101 = vector.broadcast %c16_i32_43 : i32 to vector<1x256xi32>
      %102 = arith.cmpi slt, %100, %101 : vector<1x256xi32>
      %103 = arith.andi %98, %102 : vector<1x256xi1>
      %c0_i32_44 = arith.constant 0 : i32
      %104 = vector.broadcast %c0_i32_44 : i32 to vector<1x256xi32>
      %105 = arith.addi %24, %104 : vector<1x256xi32>
      %c0_i32_45 = arith.constant 0 : i32
      %106 = vector.broadcast %c0_i32_45 : i32 to vector<1x256xi32>
      %107 = arith.cmpi sge, %105, %106 : vector<1x256xi32>
      %c0_i32_46 = arith.constant 0 : i32
      %108 = vector.broadcast %c0_i32_46 : i32 to vector<1x256xi32>
      %109 = arith.addi %24, %108 : vector<1x256xi32>
      %c16_i32_47 = arith.constant 16 : i32
      %110 = vector.broadcast %c16_i32_47 : i32 to vector<1x256xi32>
      %111 = arith.cmpi slt, %109, %110 : vector<1x256xi32>
      %112 = arith.andi %107, %111 : vector<1x256xi1>
      %c2_i32_48 = arith.constant 2 : i32
      %113 = vector.broadcast %c2_i32_48 : i32 to vector<1x256xi32>
      %114 = arith.addi %27, %113 : vector<1x256xi32>
      %c0_i32_49 = arith.constant 0 : i32
      %115 = vector.broadcast %c0_i32_49 : i32 to vector<1x256xi32>
      %116 = arith.cmpi sge, %114, %115 : vector<1x256xi32>
      %117 = arith.andi %112, %116 : vector<1x256xi1>
      %c2_i32_50 = arith.constant 2 : i32
      %118 = vector.broadcast %c2_i32_50 : i32 to vector<1x256xi32>
      %119 = arith.addi %27, %118 : vector<1x256xi32>
      %c16_i32_51 = arith.constant 16 : i32
      %120 = vector.broadcast %c16_i32_51 : i32 to vector<1x256xi32>
      %121 = arith.cmpi slt, %119, %120 : vector<1x256xi32>
      %122 = arith.andi %117, %121 : vector<1x256xi1>
      %c2_i32_52 = arith.constant 2 : i32
      %123 = vector.broadcast %c2_i32_52 : i32 to vector<1x256xi32>
      %124 = arith.addi %24, %123 : vector<1x256xi32>
      %c0_i32_53 = arith.constant 0 : i32
      %125 = vector.broadcast %c0_i32_53 : i32 to vector<1x256xi32>
      %126 = arith.cmpi sge, %124, %125 : vector<1x256xi32>
      %c2_i32_54 = arith.constant 2 : i32
      %127 = vector.broadcast %c2_i32_54 : i32 to vector<1x256xi32>
      %128 = arith.addi %24, %127 : vector<1x256xi32>
      %c16_i32_55 = arith.constant 16 : i32
      %129 = vector.broadcast %c16_i32_55 : i32 to vector<1x256xi32>
      %130 = arith.cmpi slt, %128, %129 : vector<1x256xi32>
      %131 = arith.andi %126, %130 : vector<1x256xi1>
      %c-2_i32_56 = arith.constant -2 : i32
      %132 = vector.broadcast %c-2_i32_56 : i32 to vector<1x256xi32>
      %133 = arith.addi %27, %132 : vector<1x256xi32>
      %c0_i32_57 = arith.constant 0 : i32
      %134 = vector.broadcast %c0_i32_57 : i32 to vector<1x256xi32>
      %135 = arith.cmpi sge, %133, %134 : vector<1x256xi32>
      %136 = arith.andi %131, %135 : vector<1x256xi1>
      %c-2_i32_58 = arith.constant -2 : i32
      %137 = vector.broadcast %c-2_i32_58 : i32 to vector<1x256xi32>
      %138 = arith.addi %27, %137 : vector<1x256xi32>
      %c16_i32_59 = arith.constant 16 : i32
      %139 = vector.broadcast %c16_i32_59 : i32 to vector<1x256xi32>
      %140 = arith.cmpi slt, %138, %139 : vector<1x256xi32>
      %141 = arith.andi %136, %140 : vector<1x256xi1>
      %c2_i32_60 = arith.constant 2 : i32
      %142 = vector.broadcast %c2_i32_60 : i32 to vector<1x256xi32>
      %143 = arith.addi %24, %142 : vector<1x256xi32>
      %c0_i32_61 = arith.constant 0 : i32
      %144 = vector.broadcast %c0_i32_61 : i32 to vector<1x256xi32>
      %145 = arith.cmpi sge, %143, %144 : vector<1x256xi32>
      %c2_i32_62 = arith.constant 2 : i32
      %146 = vector.broadcast %c2_i32_62 : i32 to vector<1x256xi32>
      %147 = arith.addi %24, %146 : vector<1x256xi32>
      %c16_i32_63 = arith.constant 16 : i32
      %148 = vector.broadcast %c16_i32_63 : i32 to vector<1x256xi32>
      %149 = arith.cmpi slt, %147, %148 : vector<1x256xi32>
      %150 = arith.andi %145, %149 : vector<1x256xi1>
      %c0_i32_64 = arith.constant 0 : i32
      %151 = vector.broadcast %c0_i32_64 : i32 to vector<1x256xi32>
      %152 = arith.addi %27, %151 : vector<1x256xi32>
      %c0_i32_65 = arith.constant 0 : i32
      %153 = vector.broadcast %c0_i32_65 : i32 to vector<1x256xi32>
      %154 = arith.cmpi sge, %152, %153 : vector<1x256xi32>
      %155 = arith.andi %150, %154 : vector<1x256xi1>
      %c0_i32_66 = arith.constant 0 : i32
      %156 = vector.broadcast %c0_i32_66 : i32 to vector<1x256xi32>
      %157 = arith.addi %27, %156 : vector<1x256xi32>
      %c16_i32_67 = arith.constant 16 : i32
      %158 = vector.broadcast %c16_i32_67 : i32 to vector<1x256xi32>
      %159 = arith.cmpi slt, %157, %158 : vector<1x256xi32>
      %160 = arith.andi %155, %159 : vector<1x256xi1>
      %c2_i32_68 = arith.constant 2 : i32
      %161 = vector.broadcast %c2_i32_68 : i32 to vector<1x256xi32>
      %162 = arith.addi %24, %161 : vector<1x256xi32>
      %c0_i32_69 = arith.constant 0 : i32
      %163 = vector.broadcast %c0_i32_69 : i32 to vector<1x256xi32>
      %164 = arith.cmpi sge, %162, %163 : vector<1x256xi32>
      %c2_i32_70 = arith.constant 2 : i32
      %165 = vector.broadcast %c2_i32_70 : i32 to vector<1x256xi32>
      %166 = arith.addi %24, %165 : vector<1x256xi32>
      %c16_i32_71 = arith.constant 16 : i32
      %167 = vector.broadcast %c16_i32_71 : i32 to vector<1x256xi32>
      %168 = arith.cmpi slt, %166, %167 : vector<1x256xi32>
      %169 = arith.andi %164, %168 : vector<1x256xi1>
      %c2_i32_72 = arith.constant 2 : i32
      %170 = vector.broadcast %c2_i32_72 : i32 to vector<1x256xi32>
      %171 = arith.addi %27, %170 : vector<1x256xi32>
      %c0_i32_73 = arith.constant 0 : i32
      %172 = vector.broadcast %c0_i32_73 : i32 to vector<1x256xi32>
      %173 = arith.cmpi sge, %171, %172 : vector<1x256xi32>
      %174 = arith.andi %169, %173 : vector<1x256xi1>
      %c2_i32_74 = arith.constant 2 : i32
      %175 = vector.broadcast %c2_i32_74 : i32 to vector<1x256xi32>
      %176 = arith.addi %27, %175 : vector<1x256xi32>
      %c16_i32_75 = arith.constant 16 : i32
      %177 = vector.broadcast %c16_i32_75 : i32 to vector<1x256xi32>
      %178 = arith.cmpi slt, %176, %177 : vector<1x256xi32>
      %179 = arith.andi %174, %178 : vector<1x256xi1>
      %cst_76 = arith.constant 0.000000e+00 : f32
      %180 = vector.broadcast %cst_76 : f32 to vector<1x256xf32>
      %c0_77 = arith.constant 0 : index
      %181 = memref.load %arg3[%c0_77] : memref<18xf32, #tpu.memory_space<smem>>
      %c34_i32 = arith.constant 34 : i32
      %182 = tpu.dynamic_rotate %17 by %c34_i32 dim 1 : vector<1x256xf32>, i32 -> vector<1x256xf32>
      %183 = vector.broadcast %181 : f32 to vector<1x256xf32>
      %184 = arith.mulf %183, %182 : vector<1x256xf32>
      %c9 = arith.constant 9 : index
      %185 = memref.load %arg3[%c9] : memref<18xf32, #tpu.memory_space<smem>>
      %c34_i32_78 = arith.constant 34 : i32
      %186 = tpu.dynamic_rotate %18 by %c34_i32_78 dim 1 : vector<1x256xf32>, i32 -> vector<1x256xf32>
      %187 = vector.broadcast %185 : f32 to vector<1x256xf32>
      %188 = arith.mulf %187, %186 : vector<1x256xf32>
      %189 = arith.addf %184, %188 : vector<1x256xf32>
      %cst_79 = arith.constant 0.000000e+00 : f32
      %190 = vector.broadcast %cst_79 : f32 to vector<1x256xf32>
      %191 = arith.select %46, %189, %190 : vector<1x256xi1>, vector<1x256xf32>
      %192 = arith.addf %180, %191 : vector<1x256xf32>
      %c1 = arith.constant 1 : index
      %193 = memref.load %arg3[%c1] : memref<18xf32, #tpu.memory_space<smem>>
      %c32_i32 = arith.constant 32 : i32
      %194 = tpu.dynamic_rotate %17 by %c32_i32 dim 1 : vector<1x256xf32>, i32 -> vector<1x256xf32>
      %195 = vector.broadcast %193 : f32 to vector<1x256xf32>
      %196 = arith.mulf %195, %194 : vector<1x256xf32>
      %c10 = arith.constant 10 : index
      %197 = memref.load %arg3[%c10] : memref<18xf32, #tpu.memory_space<smem>>
      %c32_i32_80 = arith.constant 32 : i32
      %198 = tpu.dynamic_rotate %18 by %c32_i32_80 dim 1 : vector<1x256xf32>, i32 -> vector<1x256xf32>
      %199 = vector.broadcast %197 : f32 to vector<1x256xf32>
      %200 = arith.mulf %199, %198 : vector<1x256xf32>
      %201 = arith.addf %196, %200 : vector<1x256xf32>
      %cst_81 = arith.constant 0.000000e+00 : f32
      %202 = vector.broadcast %cst_81 : f32 to vector<1x256xf32>
      %203 = arith.select %65, %201, %202 : vector<1x256xi1>, vector<1x256xf32>
      %204 = arith.addf %192, %203 : vector<1x256xf32>
      %c2 = arith.constant 2 : index
      %205 = memref.load %arg3[%c2] : memref<18xf32, #tpu.memory_space<smem>>
      %c30_i32 = arith.constant 30 : i32
      %206 = tpu.dynamic_rotate %17 by %c30_i32 dim 1 : vector<1x256xf32>, i32 -> vector<1x256xf32>
      %207 = vector.broadcast %205 : f32 to vector<1x256xf32>
      %208 = arith.mulf %207, %206 : vector<1x256xf32>
      %c11 = arith.constant 11 : index
      %209 = memref.load %arg3[%c11] : memref<18xf32, #tpu.memory_space<smem>>
      %c30_i32_82 = arith.constant 30 : i32
      %210 = tpu.dynamic_rotate %18 by %c30_i32_82 dim 1 : vector<1x256xf32>, i32 -> vector<1x256xf32>
      %211 = vector.broadcast %209 : f32 to vector<1x256xf32>
      %212 = arith.mulf %211, %210 : vector<1x256xf32>
      %213 = arith.addf %208, %212 : vector<1x256xf32>
      %cst_83 = arith.constant 0.000000e+00 : f32
      %214 = vector.broadcast %cst_83 : f32 to vector<1x256xf32>
      %215 = arith.select %84, %213, %214 : vector<1x256xi1>, vector<1x256xf32>
      %216 = arith.addf %204, %215 : vector<1x256xf32>
      %c3 = arith.constant 3 : index
      %217 = memref.load %arg3[%c3] : memref<18xf32, #tpu.memory_space<smem>>
      %c2_i32_84 = arith.constant 2 : i32
      %218 = tpu.dynamic_rotate %17 by %c2_i32_84 dim 1 : vector<1x256xf32>, i32 -> vector<1x256xf32>
      %219 = vector.broadcast %217 : f32 to vector<1x256xf32>
      %220 = arith.mulf %219, %218 : vector<1x256xf32>
      %c12 = arith.constant 12 : index
      %221 = memref.load %arg3[%c12] : memref<18xf32, #tpu.memory_space<smem>>
      %c2_i32_85 = arith.constant 2 : i32
      %222 = tpu.dynamic_rotate %18 by %c2_i32_85 dim 1 : vector<1x256xf32>, i32 -> vector<1x256xf32>
      %223 = vector.broadcast %221 : f32 to vector<1x256xf32>
      %224 = arith.mulf %223, %222 : vector<1x256xf32>
      %225 = arith.addf %220, %224 : vector<1x256xf32>
      %cst_86 = arith.constant 0.000000e+00 : f32
      %226 = vector.broadcast %cst_86 : f32 to vector<1x256xf32>
      %227 = arith.select %103, %225, %226 : vector<1x256xi1>, vector<1x256xf32>
      %228 = arith.addf %216, %227 : vector<1x256xf32>
      %c4 = arith.constant 4 : index
      %229 = memref.load %arg3[%c4] : memref<18xf32, #tpu.memory_space<smem>>
      %230 = vector.broadcast %229 : f32 to vector<1x256xf32>
      %231 = arith.mulf %230, %17 : vector<1x256xf32>
      %c13 = arith.constant 13 : index
      %232 = memref.load %arg3[%c13] : memref<18xf32, #tpu.memory_space<smem>>
      %233 = vector.broadcast %232 : f32 to vector<1x256xf32>
      %234 = arith.mulf %233, %18 : vector<1x256xf32>
      %235 = arith.addf %231, %234 : vector<1x256xf32>
      %236 = arith.addf %228, %235 : vector<1x256xf32>
      %c5 = arith.constant 5 : index
      %237 = memref.load %arg3[%c5] : memref<18xf32, #tpu.memory_space<smem>>
      %c254_i32 = arith.constant 254 : i32
      %238 = tpu.dynamic_rotate %17 by %c254_i32 dim 1 : vector<1x256xf32>, i32 -> vector<1x256xf32>
      %239 = vector.broadcast %237 : f32 to vector<1x256xf32>
      %240 = arith.mulf %239, %238 : vector<1x256xf32>
      %c14 = arith.constant 14 : index
      %241 = memref.load %arg3[%c14] : memref<18xf32, #tpu.memory_space<smem>>
      %c254_i32_87 = arith.constant 254 : i32
      %242 = tpu.dynamic_rotate %18 by %c254_i32_87 dim 1 : vector<1x256xf32>, i32 -> vector<1x256xf32>
      %243 = vector.broadcast %241 : f32 to vector<1x256xf32>
      %244 = arith.mulf %243, %242 : vector<1x256xf32>
      %245 = arith.addf %240, %244 : vector<1x256xf32>
      %cst_88 = arith.constant 0.000000e+00 : f32
      %246 = vector.broadcast %cst_88 : f32 to vector<1x256xf32>
      %247 = arith.select %122, %245, %246 : vector<1x256xi1>, vector<1x256xf32>
      %248 = arith.addf %236, %247 : vector<1x256xf32>
      %c6 = arith.constant 6 : index
      %249 = memref.load %arg3[%c6] : memref<18xf32, #tpu.memory_space<smem>>
      %c226_i32 = arith.constant 226 : i32
      %250 = tpu.dynamic_rotate %17 by %c226_i32 dim 1 : vector<1x256xf32>, i32 -> vector<1x256xf32>
      %251 = vector.broadcast %249 : f32 to vector<1x256xf32>
      %252 = arith.mulf %251, %250 : vector<1x256xf32>
      %c15 = arith.constant 15 : index
      %253 = memref.load %arg3[%c15] : memref<18xf32, #tpu.memory_space<smem>>
      %c226_i32_89 = arith.constant 226 : i32
      %254 = tpu.dynamic_rotate %18 by %c226_i32_89 dim 1 : vector<1x256xf32>, i32 -> vector<1x256xf32>
      %255 = vector.broadcast %253 : f32 to vector<1x256xf32>
      %256 = arith.mulf %255, %254 : vector<1x256xf32>
      %257 = arith.addf %252, %256 : vector<1x256xf32>
      %cst_90 = arith.constant 0.000000e+00 : f32
      %258 = vector.broadcast %cst_90 : f32 to vector<1x256xf32>
      %259 = arith.select %141, %257, %258 : vector<1x256xi1>, vector<1x256xf32>
      %260 = arith.addf %248, %259 : vector<1x256xf32>
      %c7 = arith.constant 7 : index
      %261 = memref.load %arg3[%c7] : memref<18xf32, #tpu.memory_space<smem>>
      %c224_i32 = arith.constant 224 : i32
      %262 = tpu.dynamic_rotate %17 by %c224_i32 dim 1 : vector<1x256xf32>, i32 -> vector<1x256xf32>
      %263 = vector.broadcast %261 : f32 to vector<1x256xf32>
      %264 = arith.mulf %263, %262 : vector<1x256xf32>
      %c16 = arith.constant 16 : index
      %265 = memref.load %arg3[%c16] : memref<18xf32, #tpu.memory_space<smem>>
      %c224_i32_91 = arith.constant 224 : i32
      %266 = tpu.dynamic_rotate %18 by %c224_i32_91 dim 1 : vector<1x256xf32>, i32 -> vector<1x256xf32>
      %267 = vector.broadcast %265 : f32 to vector<1x256xf32>
      %268 = arith.mulf %267, %266 : vector<1x256xf32>
      %269 = arith.addf %264, %268 : vector<1x256xf32>
      %cst_92 = arith.constant 0.000000e+00 : f32
      %270 = vector.broadcast %cst_92 : f32 to vector<1x256xf32>
      %271 = arith.select %160, %269, %270 : vector<1x256xi1>, vector<1x256xf32>
      %272 = arith.addf %260, %271 : vector<1x256xf32>
      %c8 = arith.constant 8 : index
      %273 = memref.load %arg3[%c8] : memref<18xf32, #tpu.memory_space<smem>>
      %c222_i32 = arith.constant 222 : i32
      %274 = tpu.dynamic_rotate %17 by %c222_i32 dim 1 : vector<1x256xf32>, i32 -> vector<1x256xf32>
      %275 = vector.broadcast %273 : f32 to vector<1x256xf32>
      %276 = arith.mulf %275, %274 : vector<1x256xf32>
      %c17 = arith.constant 17 : index
      %277 = memref.load %arg3[%c17] : memref<18xf32, #tpu.memory_space<smem>>
      %c222_i32_93 = arith.constant 222 : i32
      %278 = tpu.dynamic_rotate %18 by %c222_i32_93 dim 1 : vector<1x256xf32>, i32 -> vector<1x256xf32>
      %279 = vector.broadcast %277 : f32 to vector<1x256xf32>
      %280 = arith.mulf %279, %278 : vector<1x256xf32>
      %281 = arith.addf %276, %280 : vector<1x256xf32>
      %cst_94 = arith.constant 0.000000e+00 : f32
      %282 = vector.broadcast %cst_94 : f32 to vector<1x256xf32>
      %283 = arith.select %179, %281, %282 : vector<1x256xi1>, vector<1x256xf32>
      %284 = arith.addf %272, %283 : vector<1x256xf32>
      %cst_95 = arith.constant 0.000000e+00 : f32
      %285 = vector.broadcast %cst_95 : f32 to vector<1x256xf32>
      %c0_96 = arith.constant 0 : index
      %286 = memref.load %arg4[%c0_96] : memref<9xf32, #tpu.memory_space<smem>>
      %c34_i32_97 = arith.constant 34 : i32
      %287 = tpu.dynamic_rotate %284 by %c34_i32_97 dim 1 : vector<1x256xf32>, i32 -> vector<1x256xf32>
      %288 = vector.broadcast %286 : f32 to vector<1x256xf32>
      %289 = arith.mulf %288, %287 : vector<1x256xf32>
      %cst_98 = arith.constant 0.000000e+00 : f32
      %290 = vector.broadcast %cst_98 : f32 to vector<1x256xf32>
      %291 = arith.select %46, %289, %290 : vector<1x256xi1>, vector<1x256xf32>
      %292 = arith.addf %285, %291 : vector<1x256xf32>
      %c1_99 = arith.constant 1 : index
      %293 = memref.load %arg4[%c1_99] : memref<9xf32, #tpu.memory_space<smem>>
      %c32_i32_100 = arith.constant 32 : i32
      %294 = tpu.dynamic_rotate %284 by %c32_i32_100 dim 1 : vector<1x256xf32>, i32 -> vector<1x256xf32>
      %295 = vector.broadcast %293 : f32 to vector<1x256xf32>
      %296 = arith.mulf %295, %294 : vector<1x256xf32>
      %cst_101 = arith.constant 0.000000e+00 : f32
      %297 = vector.broadcast %cst_101 : f32 to vector<1x256xf32>
      %298 = arith.select %65, %296, %297 : vector<1x256xi1>, vector<1x256xf32>
      %299 = arith.addf %292, %298 : vector<1x256xf32>
      %c2_102 = arith.constant 2 : index
      %300 = memref.load %arg4[%c2_102] : memref<9xf32, #tpu.memory_space<smem>>
      %c30_i32_103 = arith.constant 30 : i32
      %301 = tpu.dynamic_rotate %284 by %c30_i32_103 dim 1 : vector<1x256xf32>, i32 -> vector<1x256xf32>
      %302 = vector.broadcast %300 : f32 to vector<1x256xf32>
      %303 = arith.mulf %302, %301 : vector<1x256xf32>
      %cst_104 = arith.constant 0.000000e+00 : f32
      %304 = vector.broadcast %cst_104 : f32 to vector<1x256xf32>
      %305 = arith.select %84, %303, %304 : vector<1x256xi1>, vector<1x256xf32>
      %306 = arith.addf %299, %305 : vector<1x256xf32>
      %c3_105 = arith.constant 3 : index
      %307 = memref.load %arg4[%c3_105] : memref<9xf32, #tpu.memory_space<smem>>
      %c2_i32_106 = arith.constant 2 : i32
      %308 = tpu.dynamic_rotate %284 by %c2_i32_106 dim 1 : vector<1x256xf32>, i32 -> vector<1x256xf32>
      %309 = vector.broadcast %307 : f32 to vector<1x256xf32>
      %310 = arith.mulf %309, %308 : vector<1x256xf32>
      %cst_107 = arith.constant 0.000000e+00 : f32
      %311 = vector.broadcast %cst_107 : f32 to vector<1x256xf32>
      %312 = arith.select %103, %310, %311 : vector<1x256xi1>, vector<1x256xf32>
      %313 = arith.addf %306, %312 : vector<1x256xf32>
      %c4_108 = arith.constant 4 : index
      %314 = memref.load %arg4[%c4_108] : memref<9xf32, #tpu.memory_space<smem>>
      %315 = vector.broadcast %314 : f32 to vector<1x256xf32>
      %316 = arith.mulf %315, %284 : vector<1x256xf32>
      %317 = arith.addf %313, %316 : vector<1x256xf32>
      %c5_109 = arith.constant 5 : index
      %318 = memref.load %arg4[%c5_109] : memref<9xf32, #tpu.memory_space<smem>>
      %c254_i32_110 = arith.constant 254 : i32
      %319 = tpu.dynamic_rotate %284 by %c254_i32_110 dim 1 : vector<1x256xf32>, i32 -> vector<1x256xf32>
      %320 = vector.broadcast %318 : f32 to vector<1x256xf32>
      %321 = arith.mulf %320, %319 : vector<1x256xf32>
      %cst_111 = arith.constant 0.000000e+00 : f32
      %322 = vector.broadcast %cst_111 : f32 to vector<1x256xf32>
      %323 = arith.select %122, %321, %322 : vector<1x256xi1>, vector<1x256xf32>
      %324 = arith.addf %317, %323 : vector<1x256xf32>
      %c6_112 = arith.constant 6 : index
      %325 = memref.load %arg4[%c6_112] : memref<9xf32, #tpu.memory_space<smem>>
      %c226_i32_113 = arith.constant 226 : i32
      %326 = tpu.dynamic_rotate %284 by %c226_i32_113 dim 1 : vector<1x256xf32>, i32 -> vector<1x256xf32>
      %327 = vector.broadcast %325 : f32 to vector<1x256xf32>
      %328 = arith.mulf %327, %326 : vector<1x256xf32>
      %cst_114 = arith.constant 0.000000e+00 : f32
      %329 = vector.broadcast %cst_114 : f32 to vector<1x256xf32>
      %330 = arith.select %141, %328, %329 : vector<1x256xi1>, vector<1x256xf32>
      %331 = arith.addf %324, %330 : vector<1x256xf32>
      %c7_115 = arith.constant 7 : index
      %332 = memref.load %arg4[%c7_115] : memref<9xf32, #tpu.memory_space<smem>>
      %c224_i32_116 = arith.constant 224 : i32
      %333 = tpu.dynamic_rotate %284 by %c224_i32_116 dim 1 : vector<1x256xf32>, i32 -> vector<1x256xf32>
      %334 = vector.broadcast %332 : f32 to vector<1x256xf32>
      %335 = arith.mulf %334, %333 : vector<1x256xf32>
      %cst_117 = arith.constant 0.000000e+00 : f32
      %336 = vector.broadcast %cst_117 : f32 to vector<1x256xf32>
      %337 = arith.select %160, %335, %336 : vector<1x256xi1>, vector<1x256xf32>
      %338 = arith.addf %331, %337 : vector<1x256xf32>
      %c8_118 = arith.constant 8 : index
      %339 = memref.load %arg4[%c8_118] : memref<9xf32, #tpu.memory_space<smem>>
      %c222_i32_119 = arith.constant 222 : i32
      %340 = tpu.dynamic_rotate %284 by %c222_i32_119 dim 1 : vector<1x256xf32>, i32 -> vector<1x256xf32>
      %341 = vector.broadcast %339 : f32 to vector<1x256xf32>
      %342 = arith.mulf %341, %340 : vector<1x256xf32>
      %cst_120 = arith.constant 0.000000e+00 : f32
      %343 = vector.broadcast %cst_120 : f32 to vector<1x256xf32>
      %344 = arith.select %179, %342, %343 : vector<1x256xi1>, vector<1x256xf32>
      %345 = arith.addf %338, %344 : vector<1x256xf32>
      %c0_121 = arith.constant 0 : index
      %c0_122 = arith.constant 0 : index
      %c0_123 = arith.constant 0 : index
      %346 = vector.load %arg5[%c0_121, %c0_122, %c0_123] : memref<1x1x256xf32, #tpu.memory_space<vmem>>, vector<1x1x256xf32>
      %347 = vector.shape_cast %346 : vector<1x1x256xf32> to vector<1x256xf32>
      %348 = vector.shape_cast %345 : vector<1x256xf32> to vector<1x1x256xf32>
      tpu.vector_store %arg5[%c0_121, %c0_122, %c0_123], %348 {strides = array<i32>} : memref<1x1x256xf32, #tpu.memory_space<vmem>>, vector<1x1x256xf32>,
    } else {
    }
    return
  }
  func.func @transform_0(%arg0: i32, %arg1: i32) -> (i32, i32, i32) {
    %c0_i32 = arith.constant 0 : i32
    %c0_i32_0 = arith.constant 0 : i32
    return %arg0, %arg1, %c0_i32 : i32, i32, i32
  }
  func.func @transform_1(%arg0: i32, %arg1: i32) -> i32 {
    %c0_i32 = arith.constant 0 : i32
    %c0_i32_0 = arith.constant 0 : i32
    return %c0_i32 : i32
  }
  func.func @transform_2(%arg0: i32, %arg1: i32) -> i32 {
    %c0_i32 = arith.constant 0 : i32
    %c0_i32_0 = arith.constant 0 : i32
    return %c0_i32 : i32
  }
  func.func @transform_3(%arg0: i32, %arg1: i32) -> (i32, i32, i32) {
    %c0_i32 = arith.constant 0 : i32
    %c0_i32_0 = arith.constant 0 : i32
    %c0_i32_1 = arith.constant 0 : i32
    return %arg0, %c0_i32, %c0_i32_0 : i32, i32, i32
  }
}

</mosaic_0001>

<bundles_post_ra>
// kernel: tpu_custom_call.1
= control target key start
LH: loop header
LB: loop body
LE: loop exit
PB: predicated region body
PF: predicated region fallthrough
CT: control target
= control target key end

     0   :  { %8 = vsyncpa [#allocation5], 0  ;;  %s2247_s0 = inlined_call_operand.hbm [shape: f32[2,4,256], index: 0, kind: input, shape index: {}]   ;;  %s2248_s1 = inlined_call_operand.vmem [shape: f32[18], index: 1, kind: input, shape index: {}]   ;;  %s2249_s2 = inlined_call_operand.vmem [shape: f32[9], index: 2, kind: input, shape index: {}]   ;;  %s2250_s3 = inlined_call_operand.hbm [shape: f32[2,1,256], index: 3, kind: output, shape index: {}]  }
   0x1   :  { %10 = vsyncpa [#allocation5 + $0x1], 0 }
   0x2   :  { %11 = vsyncpa [#allocation7], 0 }
   0x3   :  { %12 = vsyncpa [#allocation10], 0 }
   0x4   :  { %13 = vsyncpa [#allocation6], 0 }
   0x5   :  { %15 = vsyncpa [#allocation6 + $0x1], 0  ;;  %s1296_s12 = smov 0   ;;  %s1298_s13 = smov 0  }
   0x6   :  { %s1300_s14 = smov 0   ;;  %s1302_s15 = smov 0  }
   0x7   :  { %s1304_s16 = smov 0   ;;  %s1306_s17 = smov 0  }
   0x8 LB: > { %s968_s18 = sadd.s32 4294967295, %s1261_s17   ;;  %s969_s19 = sadd.s32 4294967294, %s1261_s17   ;;  %s1261_s17 = sphi %s1306_s17, %s21_s17   ;;  %s1257_s16 = sphi %s1304_s16, %s2427_s16   ;;  %s1253_s15 = sphi %s1302_s15, %s2426_s15   ;;  %s1249_s14 = sphi %s1300_s14, %s2425_s14   ;;  %s1245_s13 = sphi %s1298_s13, %s2424_s13   ;;  %s1241_s12 = sphi %s1296_s12, %s2423_s12  }
   0x9   : > { %p55_p0 = scmp.ne.s32.totalorder %s1245_s13, %s1241_s12  ;;  %p1330_p1 = scmp.eq.s32.totalorder %s968_s18, 0 }
   0xa   : > { %p1334_p2 = scmp.eq.s32.totalorder %s968_s18, 1  ;;  %p127_p3 = scmp.eq.s32.totalorder %s969_s19, 1 }
   0xb   : > { %s2267_s20 = scalar_select %p1330_p1, 1, 0 }
   0xc   : > { %s2268_s21 = scalar_select %p1334_p2, 1, 0 }
   0xd   : > { %p1340_p4 = por %p1330_p1, %p55_p0  ;;  %p970_p5 = scmp.ge.s32.totalorder %s1261_s17, 1 }
   0xe   : > { %p1345_p6 = por %p127_p3, %p55_p0  ;;  %p134_p7 = scmp.lt.s32.totalorder %s1261_s17, 3 }
   0xf   : > { %s2269_s22 = scalar_select %p1340_p4, 1, 0 }
  0x10   : > { %s2270_s23 = scalar_select %p1345_p6, 1, 0 }
  0x11   : > { %s147_s26 = sshll.u32 %s2248_s1, 4  ;;  %p1353_p8 = pnand %p970_p5, %p134_p7  ;;  %s148_s26 = int_to_ptr.vmem [resolvable:$true] %s147_s26 }
  0x12   : > { %s158_s30 = sshll.u32 %s2249_s2, 4  ;;  %s1111_s5 = scalar_lea.vmem %s148_s26, 16  ;;  %s159_s30 = int_to_ptr.vmem [resolvable:$true] %s158_s30 }
  0x13   : > { %s2271_s27 = scalar_select %p1353_p8, 1, 0 }
  0x14   : > { %p1030_p10 = pneg %p1353_p8  ;;  %p1112_p12 = scmp.ne.s32.totalorder %s148_s26, %s1111_s5 }
  0x15   : > { %p1119_p5 = scmp.lt.s32.totalorder %s148_s26, %s148_s26  ;;  %p1120_p7 = scmp.lt.s32.totalorder %s1111_s5, %s1111_s5 }
  0x16   : > { %p1365_p11 = pnand %p1030_p10, %p1330_p1 }
  0x17   : > { %p1121_p9 = por %p1120_p7, %p1119_p5 }
  0x18   : > { %p1113_p13 = pneg %p1365_p11 }
  0x1a   : > { %p1114_p0 = pnand %p1113_p13, %p1112_p12 }
  0x1c   : > { %p1115_p3 = pneg %p1114_p0 }
  0x1e   : > { %p1122_p6 = pnand %p1121_p9, %p1115_p3 }
  0x20   : > { %1125 = shalt.err (!%p1122_p6)
}
  0x21   : > { %s1263_s6 = smov [#allocation8]   ;;  %s1126_s7 = scalar_lea.vmem %s159_s30, 16 }
  0x22   : > { %1033 = dma.vmem_to_smem (!%p1365_p11), %s148_s26, 16, %s1263_s6, [#allocation7]  }
  0x23   : > { %p1127_p10 = scmp.ne.s32.totalorder %s159_s30, %s1126_s7  ;;  %p1134_p8 = scmp.lt.s32.totalorder %s159_s30, %s159_s30 }
  0x24   : > { %p1135_p2 = scmp.lt.s32.totalorder %s1126_s7, %s1126_s7 }
  0x25   : > { %p1129_p1 = pnand %p1127_p10, %p1113_p13 }
  0x26   : > { %p1136_p12 = por %p1135_p2, %p1134_p8 }
  0x27   : > { %p1130_p4 = pneg %p1129_p1 }
  0x29   : > { %p1137_p0 = pnand %p1136_p12, %p1130_p4 }
  0x2b   : > { %1140 = shalt.err (!%p1137_p0)
}
  0x2c   : > { %s1264_s8 = smov [#allocation9]   ;;  %s33_s9 = sadd.s32 1, %s1257_s16 }
  0x2d   : > { %1036 = dma.vmem_to_smem (!%p1365_p11), %s159_s30, 16, %s1264_s8, [#allocation10]  }
  0x2e   : > { %s42_s10 = sadd.s32 1, %s1249_s14  ;;  %p35_p1 = scmp.ge.s32.totalorder %s33_s9, 2 }
  0x2f   : > { %p49_p2 = scmp.ne.s32.totalorder %s1249_s14, %s1245_s13  ;;  %p50_p4 = scmp.eq.s32.totalorder %s1261_s17, 0 }
  0x30   : > { %p1047_p6 = scmp.lt.s32.totalorder %s1261_s17, 2  ;;  %s2429_s9 = smov (%p35_p1, %s33_s9), 0 }
  0x31   : > { %p51_p8 = por %p50_p4, %p49_p2  ;;  %p2273_p9 = scmp.ne.s32.totalorder %s2268_s21, 0 }
  0x32   : > { %s37_s18 = ssub.s32 %s1257_s16, %s2429_s9  ;;  %s169_s19 = sand.u32 1, %s1249_s14  }
  0x33   : > { %p1385_p13 = por %p2273_p9, %p49_p2  ;;  %p40_p3 = scmp.eq.s32.totalorder %s37_s18, 0 }
  0x34   : > { %s974_s24 = sshll.u32 %s169_s19, 3  ;;  %s1012_s25 = sshll.u32 %s1257_s16, 7 }
  0x35   : > { %s1394_s26 = scalar_select %p40_p3, %s1249_s14, %s42_s10  }
  0x36   : > { %s1399_s30 = scalar_lea.hbm %s2247_s0, %s1012_s25  ;;  %s173_s21 = scalar_lea.vmem [#allocation4], %s974_s24 }
  0x37   : > { %s183_s4 = sshll.u32 %s173_s21, 4  ;;  %p1403_p11 = pnand %p1047_p6, %p51_p8  ;;  %s1407_s4 = int_to_ptr.vmem [resolvable:$true] %s183_s4 }
  0x38   : > { %s170_s6 = scalar_lea.sflag [#allocation5], %s169_s19  ;;  %s1141_s7 = scalar_lea.hbm %s1399_s30, 128 }
  0x39   : > { %p1142_p5 = scmp.ne.s32.totalorder %s1399_s30, %s1141_s7  ;;  %p1143_p7 = pneg %p1403_p11 }
  0x3a   : > { %s1146_s18 = scalar_lea.hbm %s2247_s0, 256  ;;  %p1147_p0 = scmp.lt.u32.totalorder %s1399_s30, %s2247_s0 }
  0x3b   : > { %p1144_p10 = pnand %p1143_p7, %p1142_p5  ;;  %p1148_p1 = scmp.lt.u32.totalorder %s1146_s18, %s1141_s7 }
  0x3c   : > { %p1150_p4 = scmp.lt.u32.totalorder %s1141_s7, %s1399_s30 }
  0x3d   : > { %p1145_p12 = pneg %p1144_p10  ;;  %p1149_p2 = por %p1148_p1, %p1147_p0 }
  0x3f   : > { %p1151_p6 = por %p1150_p4, %p1149_p2 }
  0x41   : > { %p1152_p8 = pnand %p1151_p6, %p1145_p12 }
  0x43   : > { %1155 = shalt.err (!%p1152_p8)
}
  0x44   : > { %s1156_s19 = scalar_lea.vmem %s1407_s4, 128  ;;  %s1265_s28 = smov [#allocation4]  }
  0x45   : > { %p1157_p9 = scmp.ne.s32.totalorder %s1407_s4, %s1156_s19  ;;  %s1161_s29 = sshll.u32 %s1265_s28, 4  ;;  %s1162_s29 = int_to_ptr.vmem [resolvable:$false] %s1161_s29 }
  0x46   : > { %s1163_s21 = scalar_lea.vmem %s1162_s29, 256  ;;  %p1164_p10 = scmp.lt.s32.totalorder %s1407_s4, %s1162_s29 }
  0x47   : > { %p1159_p3 = pnand %p1157_p9, %p1143_p7  ;;  %p1165_p0 = scmp.lt.s32.totalorder %s1163_s21, %s1156_s19 }
  0x49   : > { %p1160_p5 = pneg %p1159_p3  ;;  %p1166_p1 = por %p1165_p0, %p1164_p10 }
  0x4b   : > { %p1167_p2 = pnand %p1166_p1, %p1160_p5 }
  0x4d   : > { %1170 = shalt.err (!%p1167_p2)
}
  0x4e   : > { %1040 = dma.hbm_to_vmem [thread:$0]  (!%p1403_p11), %s1399_s30, 128, %s1407_s4, %s170_s6  }
  0x4f   : > { %p2276_p12 = scmp.ne.s32.totalorder %s2271_s27, 0 }
  0x50   : > { %s1437_s7 = sand.u32 (!%p2276_p12), 1, %s1245_s13   ;;  %p2277_p7 = scmp.ne.s32.totalorder (!%p2276_p12), %s2269_s22, 0 }
  0x51   : > { %192 = sbr.rel (%p2276_p12) target bundleno = 480 (0x1e0), region = 32  ;;  %s978_s8 = sshll.u32 (!%p2276_p12), %s1437_s7, 3 }
  0x52   : > { %s195_s10 = scalar_lea.sflag (!%p2276_p12), [#allocation5], %s1437_s7  ;;  %s198_s18 = scalar_lea.vmem (!%p2276_p12), [#allocation4], %s978_s8 }
  0x58   : > { %1224 = dma.done.wait (%p2277_p7), %s195_s10, 128  }
  0x59   : > { %1226 = vsyncadd (%p2277_p7), %s195_s10, 4294967168  ;;  %p2278_p4 = scmp.ne.s32.totalorder %s2267_s20, 0 }
  0x5b   : > { %1228 = dma.done.wait (%p2278_p4), [#allocation7], 16  }
  0x5c   : > { %1230 = vsyncadd (%p2278_p4), [#allocation7], 4294967280 }
  0x5d   : > { %1232 = dma.done.wait (%p2278_p4), [#allocation10], 16  }
  0x5e   : > { %1234 = vsyncadd (%p2278_p4), [#allocation10], 4294967280 }
  0x5f   : > { %211 = sfence }
  0x60   : > { %v230_v0 = vld [vmem:[%s198_s18] sm:$0xff]  ;;  %vm234_vm0 = vcmask 1043456   ;;  %v273_v11 = vlaneseq  ;;  %v1266_v16 = vmov 1966171168   ;;  %v2279_v39 = vmov 0  ;;  %s1267_s20 = smov 32  }
  0x61   : > { %v232_v1 = vcombine.high %v230_v0, %v230_v0  ;;  %v235_v2 = vsel %vm234_vm0, %v230_v0, 0.0  ;;  %v249_v3 = vsel %vm234_vm0, %v230_v0, -inf  ;;  %v271_v17 = vunpack.c.l.s4 %v1266_v16  ;;  %s1268_s22 = smov 34   ;;  %s1269_s27 = smov 30  }
  0x62   : > { %v236_v4 = vrot.slane %v235_v2, 4  ;;  %v250_v5 = vrot.slane %v249_v3, 4  ;;  %v274_v22 = vshrl.u32 %v273_v11, 7  ;;  %vm1458_vm1 = vcmp.lt.s32.totalorder %v273_v11, 256  ;;  %s1270_s30 = smov 2   ;;  %s989_s4 = sld [smem:[#allocation8 + $0x4]] }
  0x63   : > { %v256_v6 = vsel %vm234_vm0, %v232_v1, -inf  ;;  %v242_v7 = vsel %vm234_vm0, %v232_v1, 0.0  ;;  %v272_v27 = vunpack.c.0.s8 %v271_v17  ;;  %v2280_v39 = vsel %vm1458_vm1, 4294967295, %v2279_v39  ;;  %s990_s5 = sld [smem:[#allocation8 + $0xd]]  ;;  %s1271_s6 = smov 126  }
  0x64   : > { %v237_v8 = vadd.f32 %v236_v4, %v235_v2  ;;  %v251_v9 = vmax.f32 %v249_v3, %v250_v5  ;;  %v257_v10 = vrot.slane %v256_v6, 4  ;;  %v243_v12 = vrot.slane %v242_v7, 4  ;;  %s1272_s24 = smov 98   ;;  %s1273_s25 = smov 96  }
  0x65   : > { %v1454_v34 = vsub.s32 %v272_v27, %v274_v22  ;;  %v1469_v43 = vsub.s32 0, %v274_v22  ;;  %v1471_v44 = vsub.s32 1, %v274_v22  ;;  %s1274_s19 = smov 94   ;;  %v1516_v59 = vand.u32 127, %v273_v11  ;;  %s1546_s28 = sld [smem:[#allocation8 + $0x9]] }
  0x66   : > { %v238_v13 = vrot.slane %v237_v8, 2  ;;  %v252_v14 = vrot.slane %v251_v9, 2  ;;  %v258_v15 = vmax.f32 %v256_v6, %v257_v10  ;;  %v244_v18 = vadd.f32 %v243_v12, %v242_v7  ;;  %s1551_s29 = sld [smem:[#allocation8 + $0xa]]  ;;  %s1556_s21 = sld [smem:[#allocation8 + $0xb]] }
  0x67   : > { %v367_v60 = vadd.s32 128, %v1516_v59  ;;  %v368_v61 = vcvt.s32.f32 %v1516_v59  ;;  %s1558_s8 = sld [smem:[#allocation8 + $0xc]]  ;;  %s1561_s10 = sld [smem:[#allocation8]]  ;;  %vm2260_vm6 = vcmp.lt.s32.totalorder %v1516_v59, 34  ;;  %vm2259_vm7 = vcmp.lt.s32.totalorder %v1516_v59, 32 }
  0x68   : > { %v239_v19 = vadd.f32 %v238_v13, %v237_v8  ;;  %v253_v20 = vmax.f32 %v251_v9, %v252_v14  ;;  %v259_v21 = vrot.slane %v258_v15, 2  ;;  %v245_v23 = vrot.slane %v244_v18, 2  ;;  %s1566_s18 = sld [smem:[#allocation8 + $0x1]] }
  0x69   : > { %v582_v52 = vstv %s989_s4  ;;  %v585_v53 = vstv %s990_s5  ;;  %v369_v62 = vcvt.s32.f32 %v367_v60  ;;  %v371_v63 = vmul.f32 0.0625, %v368_v61  ;;  %s1568_s4 = sld [smem:[#allocation8 + $0x2]]  ;;  %s1573_s5 = sld [smem:[#allocation8 + $0x3]] }
  0x6a   : > { %v240_v24 = vrot.slane %v239_v19, 1  ;;  %v254_v25 = vrot.slane %v253_v20, 1  ;;  %v260_v26 = vmax.f32 %v258_v15, %v259_v21  ;;  %v246_v28 = vadd.f32 %v245_v23, %v244_v18 }
  0x6b   : > { %v372_v0 = vmul.f32 0.0625, %v369_v62  ;;  %v373_v3 = vfloor.f32 %v371_v63 }
  0x6c   : > { %v255_v29 = vmax.f32 %v253_v20, %v254_v25  ;;  %v261_v30 = vrot.slane %v260_v26, 1  ;;  %v241_v31 = vadd.f32 %v240_v24, %v239_v19  ;;  %v247_v32 = vrot.slane %v246_v28, 1 }
  0x6d   : > { %v374_v4 = vfloor.f32 %v372_v0  ;;  %v1014_v7 = vtrunc.f32 %v373_v3 }
  0x6e   : > { %v262_v33 = vmax.f32 %v260_v26, %v261_v30  ;;  %v248_v35 = vadd.f32 %v247_v32, %v246_v28 }
  0x6f   : > { %v1016_v8 = vtrunc.f32 %v374_v4  ;;  %v1532_v11 = vcvt.f32.s32 %v1014_v7 }
  0x70   : > { %v292_v36 = vcombine.low %v255_v29, %v262_v33  ;;  %v269_v37 = vcombine.low %v241_v31, %v248_v35  ;;  %v491_v29 = vstv %s1546_s28  ;;  %v518_v31 = vstv %s1551_s29  ;;  %s1655_s29 = sld [smem:[#allocation8 + $0x5]]  ;;  %s1798_s28 = sld [smem:[#allocation8 + $0xf]] }
  0x71   : > { %v1534_v12 = vcvt.f32.s32 %v1016_v8  ;;  %v377_v15 = vmul.u32 16, %v1532_v11  ;;  %v381_v21 = vadd.s32 4294967294, %v1532_v11  ;;  %vm417_vm0 = vcmp.ge.s32.totalorder %v1532_v11, 0 }
  0x72   : > { %v299_v38 = vrot.slane %v292_v36, %v1454_v34  ;;  %v276_v40 = vrot.slane %v269_v37, %v1454_v34  ;;  %v545_v36 = vstv %s1556_s21  ;;  %v572_v37 = vstv %s1558_s8  ;;  %s1830_s21 = sld [smem:[#allocation8 + $0x7]]  ;;  %s1950_s8 = sld [smem:[#allocation8 + $0x8]] }
  0x73   : > { %v378_v16 = vmul.u32 16, %v1534_v12  ;;  %v1549_v19 = vsub.s32 %v1516_v59, %v377_v15  ;;  %v382_v22 = vadd.s32 4294967294, %v1534_v12  ;;  %vm383_vm2 = vcmp.ge.s32.totalorder %v381_v21, 0 }
  0x74   : > { %v306_v41 = vrot.slane %v299_v38, %v1454_v34  ;;  %v283_v42 = vrot.slane %v276_v40, %v1454_v34  ;;  %vm385_vm3 = vcmp.lt.s32.totalorder %v381_v21, 16  ;;  %v470_v40 = vstv %s1561_s10  ;;  %s1659_s10 = sld [smem:[#allocation8 + $0xe]] }
  0x75   : > { %v1553_v20 = vsub.s32 %v367_v60, %v378_v16  ;;  %v1564_v25 = vadd.s32 4294967294, %v1549_v19  ;;  %vm384_vm4 = vcmp.ge.s32.totalorder %v382_v22, 0  ;;  %vm386_vm5 = vcmp.lt.s32.totalorder %v382_v22, 16  ;;  %vm1578_vm8 = vmand %vm383_vm2, %vm385_vm3 }
  0x76   : > { %308 = vst.msk [vmem:[#allocation3] sm:$0x3] %vm1458_vm1, %v306_v41  ;;  %289 = vst.msk [vmem:[#allocation2] sm:$0x3] %vm1458_vm1, %v283_v42  ;;  %v1590_v33 = vadd.s32 2, %v1549_v19  ;;  %vm2257_vm13 = vcmp.ge.s32.totalorder %v1549_v19, 0 }
  0x77   : > { %v1571_v26 = vadd.s32 4294967294, %v1553_v20  ;;  %vm2255_vm9 = vcmp.ge.s32.totalorder %v1564_v25, 0  ;;  %vm1584_vm10 = vmand %vm384_vm4, %vm386_vm5  ;;  %v1593_v35 = vadd.s32 2, %v1553_v20  ;;  %vm2258_vm3 = vcmp.ge.s32.totalorder %v1553_v20, 0 }
  0x78   : > { %vm1604_vm15 = vmand %vm1578_vm8, %vm2255_vm9  ;;  %vm419_vm12 = vcmp.lt.s32.totalorder %v1532_v11, 16  ;;  %v1665_v60 = vadd.s32 2, %v1534_v12  ;;  %vm2302_vm5 = vcmp.lt.s32.totalorder %v1553_v20, 16 }
  0x79   : > { %vm2256_vm11 = vcmp.ge.s32.totalorder %v1571_v26, 0  ;;  %vm1628_vm14 = vmand %vm1578_vm8, %vm2257_vm13 }
  0x7a   : > { %vm1616_vm4 = vmand %vm1584_vm10, %vm2256_vm11  ;;  %vm420_vm11 = vcmp.lt.s32.totalorder %v1534_v12, 16 }
  0x7b   : > { %vm1640_vm9 = vmand %vm1584_vm10, %vm2258_vm3  ;;  %vm2293_vm3 = vcmp.lt.s32.totalorder %v1549_v19, 16 }
  0x7c   : > { %vm1687_vm13 = vmand %vm1628_vm14, %vm2293_vm3  ;;  %vm2299_vm14 = vcmp.lt.s32.totalorder %v1571_v26, 16 }
  0x7d   : > { %v364_v45 = vld [vmem:[#allocation3] sm:$0x3]  ;;  %v362_v48 = vld [vmem:[#allocation2] sm:$0x3]  ;;  %vm1711_vm3 = vmand %vm1616_vm4, %vm2299_vm14 }
  0x7e   : > { %v478_v46 = vrot.slane %v364_v45, %v1469_v43  ;;  %v482_v47 = vrot.slane %v364_v45, %v1471_v44  ;;  %v363_v49 = vmul.f32 0.25, %v362_v48  ;;  %v586_v55 = vmul.f32 %v585_v53, %v364_v45 }
  0x80   : > { %512 = vrot.lane.b32.xlu0 %v478_v46, %s1267_s20  ;;  %485 = vrot.lane.b32.xlu1 %v478_v46, %s1268_s22  ;;  %v456_v50 = vrot.slane %v363_v49, %v1469_v43  ;;  %v460_v51 = vrot.slane %v363_v49, %v1471_v44  ;;  %v583_v54 = vmul.f32 %v582_v52, %v363_v49  ;;  %v562_v49 = vstv %s1573_s5  ;;  %s1952_s5 = sld [smem:[#allocation8 + $0x11]] }
  0x82   : > { %v1489_v56 = vadd.f32 %v586_v55, %v583_v54  ;;  %v1662_v55 = vadd.s32 2, %v1532_v11 }
  0x84   : > { %539 = vrot.lane.b32.xlu0 %v478_v46, %s1269_s27  ;;  %487 = vrot.lane.b32.xlu1 %v482_v47, %s1268_s22  ;;  %v592_v57 = vrot.slane %v1489_v56, %v1469_v43  ;;  %v596_v58 = vrot.slane %v1489_v56, %v1471_v44 }
  0x86   : > { %v700_v44 = vstv %s1952_s5 }
  0x88   : > { %566 = vrot.lane.b32.xlu0 %v478_v46, %s1270_s30  ;;  %514 = vrot.lane.b32.xlu1 %v482_v47, %s1267_s20 }
  0x8c   : > { %541 = vrot.lane.b32.xlu1 %v482_v47, %s1269_s27  ;;  %463 = vrot.lane.b32.xlu0 %v456_v50, %s1268_s22 }
  0x90   : > { %568 = vrot.lane.b32.xlu1 %v482_v47, %s1270_s30  ;;  %465 = vrot.lane.b32.xlu0 %v460_v51, %s1268_s22 }
  0x94   : > { %503 = vrot.lane.b32.xlu1 %v460_v51, %s1267_s20  ;;  %501 = vrot.lane.b32.xlu0 %v456_v50, %s1267_s20 }
  0x98   : > { %530 = vrot.lane.b32.xlu1 %v460_v51, %s1269_s27  ;;  %528 = vrot.lane.b32.xlu0 %v456_v50, %s1269_s27 }
  0x9c   : > { %557 = vrot.lane.b32.xlu1 %v460_v51, %s1270_s30  ;;  %555 = vrot.lane.b32.xlu0 %v456_v50, %s1270_s30 }
  0xa0   : > { %604 = vrot.lane.b32.xlu1 %v460_v51, %s1271_s6  ;;  %602 = vrot.lane.b32.xlu0 %v456_v50, %s1271_s6 }
  0xa4   : > { %615 = vrot.lane.b32.xlu1 %v482_v47, %s1271_s6  ;;  %613 = vrot.lane.b32.xlu0 %v478_v46, %s1271_s6 }
  0xa8   : > { %631 = vrot.lane.b32.xlu1 %v460_v51, %s1272_s24  ;;  %629 = vrot.lane.b32.xlu0 %v456_v50, %s1272_s24 }
  0xac   : > { %642 = vrot.lane.b32.xlu1 %v482_v47, %s1272_s24  ;;  %640 = vrot.lane.b32.xlu0 %v478_v46, %s1272_s24 }
  0xb0   : > { %658 = vrot.lane.b32.xlu1 %v460_v51, %s1273_s25  ;;  %656 = vrot.lane.b32.xlu0 %v456_v50, %s1273_s25 }
  0xb4   : > { %669 = vrot.lane.b32.xlu1 %v482_v47, %s1273_s25  ;;  %667 = vrot.lane.b32.xlu0 %v478_v46, %s1273_s25 }
  0xb8   : > { %685 = vrot.lane.b32.xlu1 %v460_v51, %s1274_s19  ;;  %683 = vrot.lane.b32.xlu0 %v456_v50, %s1274_s19 }
  0xbc   : > { %696 = vrot.lane.b32.xlu1 %v482_v47, %s1274_s19  ;;  %694 = vrot.lane.b32.xlu0 %v478_v46, %s1274_s19  ;;  %v508_v46 = vstv %s1566_s18  ;;  %v535_v47 = vstv %s1568_s4  ;;  %s1727_s18 = sld [smem:[#allocation8 + $0x6]]  ;;  %s1832_s4 = sld [smem:[#allocation8 + $0x10]] }
  0xf2   : > { %v1520_v1 = vpop.permute.xlu0 %512  ;;  %v1522_v2 = vpop.permute.xlu1 %485 }
  0xf6   : > { %v1524_v5 = vpop.permute.xlu0 %539  ;;  %v1526_v6 = vpop.permute.xlu1 %487 }
  0xf7   : > { %v490_v4 = vsel %vm2260_vm6, %v1526_v6, %v1522_v2 }
  0xf8   : > { %v492_v45 = vmul.f32 %v491_v29, %v490_v4 }
  0xfa   : > { %v1528_v9 = vpop.permute.xlu0 %566  ;;  %v1530_v10 = vpop.permute.xlu1 %514 }
  0xfb   : > { %v516_v61 = vsel %vm2259_vm7, %v1520_v1, %v1530_v10  ;;  %v517_v62 = vsel %vm2259_vm7, %v1530_v10, %v1520_v1  ;;  %v489_v1 = vsel %vm2260_vm6, %v1522_v2, %v1526_v6  ;;  %v2303_v2 = vmov 0 }
  0xfc   : > { %v519_v22 = vmul.f32 %v518_v31, %v517_v62 }
  0xfe   : > { %v1536_v13 = vpop.permute.xlu1 %541  ;;  %v1538_v14 = vpop.permute.xlu0 %463 }
 0x102   : > { %v1542_v17 = vpop.permute.xlu1 %568  ;;  %v1544_v18 = vpop.permute.xlu0 %465 }
 0x103   : > { %v468_v63 = vsel %vm2260_vm6, %v1538_v14, %v1544_v18  ;;  %v469_v0 = vsel %vm2260_vm6, %v1544_v18, %v1538_v14  ;;  %vm1719_vm6 = vmand %vm1640_vm9, %vm2302_vm5  ;;  %vm2309_vm5 = vcmp.ge.s32.totalorder %v1590_v33, 0 }
 0x104   : > { %v2304_v2 = vsel %vm1719_vm6, 4294967295, %v2303_v2  ;;  %vm1741_vm14 = vmand %vm1578_vm8, %vm2309_vm5 }
 0x105   : > { %vm1758_vm8 = vmand %vm417_vm0, %vm419_vm12  ;;  %vm2319_vm12 = vcmp.ge.s32.totalorder %v1534_v12, 0  ;;  %v2325_v12 = vmov 0 }
 0x106   : > { %v504_v23 = vpop.permute.xlu1 %503  ;;  %v502_v24 = vpop.permute.xlu0 %501  ;;  %vm1778_vm0 = vmand %vm2319_vm12, %vm420_vm11 }
 0x107   : > { %v506_v51 = vsel %vm2259_vm7, %v502_v24, %v504_v23  ;;  %v507_v52 = vsel %vm2259_vm7, %v504_v23, %v502_v24  ;;  %vm2296_vm7 = vcmp.lt.s32.totalorder %v1564_v25, 16  ;;  %v520_v23 = vmul.f32 %v518_v31, %v516_v61 }
 0x108   : > { %vm1703_vm2 = vmand %vm1604_vm15, %vm2296_vm7  ;;  %vm2305_vm7 = vcmp.lt.s32.totalorder %v1516_v59, 30  ;;  %v509_v16 = vmul.f32 %v508_v46, %v507_v52  ;;  %v510_v18 = vmul.f32 %v508_v46, %v506_v51  ;;  %v471_v24 = vmul.f32 %v470_v40, %v469_v0 }
 0x109   : > { %vm2306_vm15 = vmmov %vm2305_vm7  ;;  %v493_v46 = vmul.f32 %v491_v29, %v489_v1  ;;  %v609_v51 = vstv %s1655_s29  ;;  %v619_v52 = vstv %s1659_s10  ;;  %s2155_s29 = sld [smem:[#allocation9 + $0x8]]  ;;  %s981_s10 = sshll.u32 %s1437_s7, 1 }
 0x10a   : > { %v531_v27 = vpop.permute.xlu1 %530  ;;  %v529_v28 = vpop.permute.xlu0 %528  ;;  %vm2307_vm4 = vmmov %vm2305_vm7 }
 0x10b   : > { %v533_v6 = vsel %vm2305_vm7, %v529_v28, %v531_v27  ;;  %v534_v10 = vsel %vm2306_vm15, %v531_v27, %v529_v28  ;;  %v543_v14 = vsel %vm2307_vm4, %v1524_v5, %v1536_v13  ;;  %vm2308_vm9 = vmmov %vm2307_vm4  ;;  %v472_v27 = vmul.f32 %v470_v40, %v468_v63 }
 0x10c   : > { %v544_v15 = vsel %vm2308_vm9, %v1536_v13, %v1524_v5  ;;  %vm2312_vm7 = vcmp.ge.s32.totalorder %v1593_v35, 0  ;;  %v536_v30 = vmul.f32 %v535_v47, %v534_v10  ;;  %v537_v38 = vmul.f32 %v535_v47, %v533_v6 }
 0x10d   : > { %vm1749_vm15 = vmand %vm1584_vm10, %vm2312_vm7  ;;  %vm2317_vm9 = vcmp.lt.s32.totalorder %v1516_v59, 2  ;;  %v546_v47 = vmul.f32 %v545_v36, %v544_v15  ;;  %v547_v11 = vmul.f32 %v545_v36, %v543_v14  ;;  %v522_v36 = vadd.f32 %v520_v23, %v510_v18 }
 0x10e   : > { %v558_v41 = vpop.permute.xlu1 %557  ;;  %v556_v42 = vpop.permute.xlu0 %555  ;;  %vm2318_vm10 = vmmov %vm2317_vm9  ;;  %v494_v63 = vadd.f32 %v492_v45, %v471_v24  ;;  %v495_v0 = vadd.f32 %v493_v46, %v472_v27  ;;  %v636_v14 = vstv %s1727_s18  ;;  %vm2337_vm4 = vcmp.lt.s32.totalorder %v1571_v26, 16  ;;  %s1013_s18 = sshll.u32 %s1253_s15, 5  ;;  %s851_s15 = scalar_lea.sflag [#allocation6], %s1437_s7 }
 0x10f   : > { %v560_v32 = vsel %vm2317_vm9, %v556_v42, %v558_v41  ;;  %v561_v40 = vsel %vm2318_vm10, %v558_v41, %v556_v42  ;;  %vm2322_vm5 = vmmov %vm2317_vm9  ;;  %v521_v42 = vadd.f32 %v519_v22, %v509_v16  ;;  %vm2324_vm9 = vcmp.lt.s32.totalorder %v1590_v33, 16  ;;  %s2196_s5 = scalar_lea.hbm %s2250_s3, %s1013_s18 }
 0x110   : > { %v570_v41 = vsel %vm2322_vm5, %v1528_v9, %v1542_v17  ;;  %vm2323_vm7 = vmmov %vm2322_vm5  ;;  %vm2327_vm10 = vcmp.ge.s32.totalorder %v1564_v25, 0  ;;  %v564_v50 = vmul.f32 %v562_v49, %v560_v32  ;;  %v548_v1 = vadd.f32 %v546_v47, %v536_v30 }
 0x111   : > { %v571_v29 = vsel %vm2323_vm7, %v1542_v17, %v1528_v9  ;;  %vm1794_vm11 = vmand %vm1741_vm14, %vm2324_vm9  ;;  %v563_v17 = vmul.f32 %v562_v49, %v561_v40  ;;  %v549_v4 = vadd.f32 %v547_v11, %v537_v38  ;;  %vm2330_vm14 = vcmp.ge.s32.totalorder %v1571_v26, 0 }
 0x112   : > { %v1653_v53 = vpop.permute.xlu1 %604  ;;  %v1657_v54 = vpop.permute.xlu0 %602  ;;  %v2326_v12 = vsel %vm1794_vm11, 4294967295, %v2325_v12  ;;  %vm1804_vm12 = vmand %vm1758_vm8, %vm2327_vm10  ;;  %v573_v6 = vmul.f32 %v572_v37, %v571_v29  ;;  %v574_v10 = vmul.f32 %v572_v37, %v570_v41  ;;  %vm2331_vm7 = vcmp.lt.s32.totalorder %v1593_v35, 16 }
 0x113   : > { %vm424_vm5 = vmand %vm1778_vm0, %vm2330_vm14  ;;  %v2332_v49 = vmov 0  ;;  %v523_v15 = vsel %vm1687_vm13, %v521_v42, 0.0  ;;  %v524_v37 = vsel %vm1719_vm6, %v522_v36, 0.0  ;;  %vm2334_vm14 = vcmp.lt.s32.totalorder %v1564_v25, 16 }
 0x114   : > { %vm1824_vm9 = vmand %vm1749_vm15, %vm2331_vm7  ;;  %v2335_v16 = vmov 0  ;;  %v2338_v18 = vmov 0  ;;  %v575_v21 = vadd.f32 %v573_v6, %v563_v17  ;;  %v576_v22 = vadd.f32 %v574_v10, %v564_v50 }
 0x115   : > { %v2333_v49 = vsel %vm1824_vm9, 4294967295, %v2332_v49  ;;  %vm1842_vm15 = vmand %vm1804_vm12, %vm2334_vm14  ;;  %vm435_vm6 = vcmp.lt.s32.totalorder %v1662_v55, 16  ;;  %v496_v27 = vsel %vm1703_vm2, %v494_v63, 0.0  ;;  %v497_v5 = vsel %vm1711_vm3, %v495_v0, 0.0 }
 0x116   : > { %v616_v13 = vpop.permute.xlu1 %615  ;;  %v614_v28 = vpop.permute.xlu0 %613  ;;  %v2336_v16 = vsel %vm1842_vm15, 4294967295, %v2335_v16  ;;  %vm1850_vm1 = vmand %vm424_vm5, %vm2337_vm4  ;;  %v550_v30 = vsel %vm1794_vm11, %v548_v1, 0.0  ;;  %v551_v38 = vsel %vm1824_vm9, %v549_v4, 0.0  ;;  %vm2340_vm4 = vcmp.ge.s32.totalorder %v1590_v33, 0 }
 0x117   : > { %v2339_v18 = vsel %vm1850_vm1, 4294967295, %v2338_v18  ;;  %vm1868_vm5 = vmand %vm1758_vm8, %vm2340_vm4  ;;  %v525_v40 = vadd.f32 %v523_v15, %v496_v27  ;;  %v526_v45 = vadd.f32 %v524_v37, %v497_v5  ;;  %vm2343_vm14 = vcmp.ge.s32.totalorder %v1593_v35, 0 }
 0x118   : > { %vm1876_vm10 = vmand %vm1778_vm0, %vm2343_vm14  ;;  %vm2346_vm12 = vcmp.lt.s32.totalorder %v1516_v59, 126  ;;  %vm2350_vm0 = vcmp.ge.s32.totalorder %v1662_v55, 0  ;;  %v646_v29 = vstv %s1798_s28  ;;  %v577_v42 = vsel %vm1842_vm15, %v575_v21, 0.0  ;;  %s229_s28 = scalar_lea.vmem [#allocation11], %s981_s10 }
 0x119   : > { %v617_v47 = vsel %vm2346_vm12, %v614_v28, %v616_v13  ;;  %vm2347_vm7 = vmmov %vm2346_vm12  ;;  %vm2353_vm12 = vcmp.lt.s32.totalorder %v1590_v33, 16  ;;  %v673_v6 = vstv %s1832_s4 }
 0x11a   : > { %v1810_v61 = vpop.permute.xlu1 %631  ;;  %v630_v62 = vpop.permute.xlu0 %629  ;;  %v618_v31 = vsel %vm2347_vm7, %v616_v13, %v614_v28  ;;  %vm2348_vm8 = vmmov %vm2347_vm7  ;;  %v552_v13 = vadd.f32 %v550_v30, %v525_v40  ;;  %v553_v28 = vadd.f32 %v551_v38, %v526_v45  ;;  %v620_v9 = vmul.f32 %v619_v52, %v617_v47 }
 0x11b   : > { %v607_v11 = vsel %vm2348_vm8, %v1657_v54, %v1653_v53  ;;  %vm2349_vm4 = vmmov %vm2347_vm7  ;;  %v621_v17 = vmul.f32 %v619_v52, %v618_v31  ;;  %vm2356_vm8 = vcmp.lt.s32.totalorder %v1665_v60, 16  ;;  %vm2360_vm7 = vcmp.lt.s32.totalorder %v1516_v59, 98 }
 0x11c   : > { %v608_v48 = vsel %vm2349_vm4, %v1653_v53, %v1657_v54  ;;  %vm1896_vm14 = vmand %vm2350_vm0, %vm435_vm6  ;;  %v578_v53 = vsel %vm1850_vm1, %v576_v22, 0.0  ;;  %vm2357_vm4 = vcmp.ge.s32.totalorder %v1665_v60, 0  ;;  %v610_v1 = vmul.f32 %v609_v51, %v607_v11 }
 0x11d   : > { %vm1910_vm6 = vmand %vm1868_vm5, %vm2353_vm12  ;;  %v611_v4 = vmul.f32 %v609_v51, %v608_v48  ;;  %vm2362_vm12 = vcmp.ge.s32.totalorder %v1564_v25, 0  ;;  %v663_v60 = vstv %s1830_s21  ;;  %v579_v10 = vadd.f32 %v577_v42, %v552_v13  ;;  %s865_s21 = sshll.u32 %s229_s28, 4  ;;  %s2198_s21 = int_to_ptr.vmem [resolvable:$true] %s865_s21 }
 0x11e   : > { %v643_v23 = vpop.permute.xlu1 %642  ;;  %v641_v24 = vpop.permute.xlu0 %640  ;;  %vm1918_vm0 = vmand %vm2357_vm4, %vm2356_vm8  ;;  %v580_v15 = vadd.f32 %v578_v53, %v553_v28  ;;  %vm2365_vm8 = vcmp.lt.s32.totalorder %v1593_v35, 16  ;;  %v622_v30 = vadd.f32 %v620_v9, %v610_v1 }
 0x11f   : > { %v644_v63 = vsel %vm2360_vm7, %v641_v24, %v643_v23  ;;  %vm2361_vm5 = vmmov %vm2360_vm7  ;;  %v623_v38 = vadd.f32 %v621_v17, %v611_v4  ;;  %v599_v17 = vadd.f32 %v592_v57, %v579_v10 }
 0x120   : > { %v645_v0 = vsel %vm2361_vm5, %v643_v23, %v641_v24  ;;  %vm1930_vm1 = vmand %vm1896_vm14, %vm2362_vm12  ;;  %vm2370_vm12 = vcmp.ge.s32.totalorder %v1571_v26, 0  ;;  %v647_v23 = vmul.f32 %v646_v29, %v644_v63  ;;  %v624_v53 = vsel %vm1910_vm6, %v622_v30, 0.0 }
 0x121   : > { %vm1940_vm7 = vmand %vm1876_vm10, %vm2365_vm8  ;;  %v648_v24 = vmul.f32 %v646_v29, %v645_v0  ;;  %vm2373_vm8 = vcmp.lt.s32.totalorder %v1516_v59, 96  ;;  %v600_v63 = vadd.f32 %v596_v58, %v580_v15  ;;  %v626_v56 = vadd.f32 %v624_v53, %v599_v17 }
 0x122   : > { %v659_v55 = vpop.permute.xlu1 %658  ;;  %v657_v36 = vpop.permute.xlu0 %656  ;;  %vm2368_vm4 = vmmov %vm2361_vm5 }
 0x123   : > { %v634_v51 = vsel %vm2368_vm4, %v630_v62, %v1810_v61  ;;  %vm2369_vm5 = vmmov %vm2368_vm4  ;;  %v661_v27 = vsel %vm2373_vm8, %v657_v36, %v659_v55 }
 0x124   : > { %v635_v21 = vsel %vm2369_vm5, %v1810_v61, %v630_v62  ;;  %vm1958_vm10 = vmand %vm1918_vm0, %vm2370_vm12  ;;  %vm2375_vm5 = vcmp.lt.s32.totalorder %v1564_v25, 16  ;;  %v637_v46 = vmul.f32 %v636_v14, %v634_v51  ;;  %v664_v11 = vmul.f32 %v663_v60, %v661_v27 }
 0x125   : > { %vm2374_vm4 = vmmov %vm2373_vm8  ;;  %v638_v47 = vmul.f32 %v636_v14, %v635_v21 }
 0x126   : > { %v662_v61 = vsel %vm2374_vm4, %v659_v55, %v657_v36  ;;  %v670_v62 = vpop.permute.xlu1 %669  ;;  %v668_v5 = vpop.permute.xlu0 %667  ;;  %vm1970_vm12 = vmand %vm1930_vm1, %vm2375_vm5  ;;  %vm2381_vm1 = vcmp.ge.s32.totalorder %v1553_v20, 0  ;;  %vm2382_vm5 = vcmp.lt.s32.totalorder %v1571_v26, 16  ;;  %v649_v29 = vadd.f32 %v647_v23, %v637_v46 }
 0x127   : > { %vm2378_vm15 = vmmov %vm2374_vm4  ;;  %v665_v48 = vmul.f32 %v663_v60, %v662_v61  ;;  %v650_v13 = vadd.f32 %v648_v24, %v638_v47  ;;  %v625_v55 = vsel %vm1940_vm7, %v623_v38, 0.0 }
 0x128   : > { %v671_v40 = vsel %vm2378_vm15, %v668_v5, %v670_v62  ;;  %vm2379_vm8 = vmmov %vm2374_vm4  ;;  %vm2380_vm4 = vcmp.ge.s32.totalorder %v1549_v19, 0  ;;  %v627_v57 = vadd.f32 %v625_v55, %v600_v63  ;;  %v651_v58 = vsel %vm1970_vm12, %v649_v29, 0.0 }
 0x129   : > { %v672_v45 = vsel %vm2379_vm8, %v670_v62, %v668_v5  ;;  %vm443_vm9 = vmand %vm1896_vm14, %vm2380_vm4  ;;  %v674_v25 = vmul.f32 %v673_v6, %v671_v40  ;;  %vm687_vm4 = vcmp.lt.s32.totalorder %v1516_v59, 94  ;;  %v653_v24 = vadd.f32 %v651_v58, %v626_v56 }
 0x12a   : > { %v675_v31 = vmul.f32 %v673_v6, %v672_v45  ;;  %vm444_vm15 = vmand %vm1918_vm0, %vm2381_vm1  ;;  %v686_v28 = vpop.permute.xlu1 %685  ;;  %v684_v42 = vpop.permute.xlu0 %683  ;;  %vm2385_vm1 = vcmp.lt.s32.totalorder %v1549_v19, 16  ;;  %v690_v19 = vstv %s1950_s8 }
 0x12b   : > { %vm1994_vm8 = vmand %vm1958_vm10, %vm2382_vm5  ;;  %v676_v36 = vadd.f32 %v674_v25, %v664_v11  ;;  %vm2388_vm10 = vcmp.lt.s32.totalorder %v1553_v20, 16  ;;  %v688_v1 = vsel %vm687_vm4, %v684_v42, %v686_v28  ;;  %v689_v4 = vsel %vm687_vm4, %v686_v28, %v684_v42 }
 0x12c   : > { %vm2005_vm11 = vmand %vm443_vm9, %vm2385_vm1  ;;  %v677_v9 = vadd.f32 %v675_v31, %v665_v48  ;;  %vm2391_vm9 = vcmp.ge.s32.totalorder %v1590_v33, 0  ;;  %v652_v20 = vsel %vm1994_vm8, %v650_v13, 0.0  ;;  %v691_v51 = vmul.f32 %v690_v19, %v688_v1 }
 0x12d   : > { %vm2017_vm5 = vmand %vm444_vm15, %vm2388_vm10  ;;  %vm2394_vm15 = vcmp.ge.s32.totalorder %v1593_v35, 0  ;;  %v678_v60 = vsel %vm2005_vm11, %v676_v36, 0.0  ;;  %v692_v21 = vmul.f32 %v690_v19, %v689_v4  ;;  %v654_v27 = vadd.f32 %v652_v20, %v627_v57 }
 0x12e   : > { %vm2030_vm1 = vmand %vm1896_vm14, %vm2391_vm9  ;;  %v697_v52 = vpop.permute.xlu1 %696  ;;  %v695_v41 = vpop.permute.xlu0 %694  ;;  %v679_v6 = vsel %vm2017_vm5, %v677_v9, 0.0  ;;  %vm2395_vm14 = vcmp.lt.s32.totalorder %v1590_v33, 16  ;;  %vm2398_vm9 = vcmp.lt.s32.totalorder %v1593_v35, 16  ;;  %v680_v30 = vadd.f32 %v678_v60, %v653_v24 }
 0x12f   : > { %vm448_vm10 = vmand %vm1918_vm0, %vm2394_vm15  ;;  %v698_v10 = vsel %vm687_vm4, %v695_v41, %v697_v52  ;;  %v699_v15 = vsel %vm687_vm4, %v697_v52, %v695_v41  ;;  %v681_v33 = vadd.f32 %v679_v6, %v654_v27 }
 0x130   : > { %vm2055_vm0 = vmand %vm2030_vm1, %vm2395_vm14  ;;  %v701_v22 = vmul.f32 %v700_v44, %v698_v10  ;;  %v702_v23 = vmul.f32 %v700_v44, %v699_v15  ;;  %vm2401_vm1 = vcmp.lt.s32.totalorder %v1516_v59, 32  ;;  %vm2403_vm14 = vcmp.lt.s32.totalorder %v1516_v59, 34 }
 0x131   : > { %vm2061_vm15 = vmand %vm448_vm10, %vm2398_vm9 }
 0x132   : > { %v703_v62 = vadd.f32 %v701_v22, %v691_v51  ;;  %v704_v5 = vadd.f32 %v702_v23, %v692_v21  ;;  %vm2402_vm10 = vmmov %vm2401_vm1 }
 0x133   : > { %vm2404_vm9 = vmmov %vm2403_vm14 }
 0x134   : > { %v705_v38 = vsel %vm2055_vm0, %v703_v62, 0.0  ;;  %v706_v40 = vsel %vm2061_vm15, %v704_v5, 0.0 }
 0x135   : > { %v2069_v45 = vadd.f32 %v705_v38, %v680_v30  ;;  %v2071_v46 = vadd.f32 %v706_v40, %v681_v33 }
 0x137   : > { %712 = vrot.lane.b32.xlu1 %v2071_v46, %s1268_s22  ;;  %710 = vrot.lane.b32.xlu0 %v2069_v45, %s1268_s22  ;;  %s709_s22 = sld [smem:[#allocation9]] }
 0x13b   : > { %726 = vrot.lane.b32.xlu1 %v2071_v46, %s1267_s20  ;;  %724 = vrot.lane.b32.xlu0 %v2069_v45, %s1267_s20  ;;  %s999_s20 = sld [smem:[#allocation9 + $0x1]] }
 0x13d   : > { %v716_v13 = vstv %s709_s22  ;;  %s1275_s22 = smov [#allocation11]  }
 0x13f   : > { %740 = vrot.lane.b32.xlu1 %v2071_v46, %s1269_s27  ;;  %738 = vrot.lane.b32.xlu0 %v2069_v45, %s1269_s27  ;;  %s1000_s27 = sld [smem:[#allocation9 + $0x2]] }
 0x141   : > { %v730_v11 = vstv %s999_s20  ;;  %s1171_s20 = scalar_lea.vmem %s2198_s21, 32 }
 0x142   : > { %p1172_p11 = scmp.ne.s32.totalorder %s2198_s21, %s1171_s20 }
 0x143   : > { %754 = vrot.lane.b32.xlu1 %v2071_v46, %s1270_s30  ;;  %752 = vrot.lane.b32.xlu0 %v2069_v45, %s1270_s30  ;;  %s2105_s30 = sld [smem:[#allocation9 + $0x3]] }
 0x144   : > { %p1173_p6 = pnand %p1172_p11, %p1385_p13 }
 0x145   : > { %v744_v53 = vstv %s1000_s27  ;;  %s1175_s27 = sshll.u32 %s1275_s22, 4  ;;  %s1176_s27 = int_to_ptr.vmem [resolvable:$false] %s1175_s27 }
 0x146   : > { %p1174_p8 = pneg %p1173_p6  ;;  %p1178_p9 = scmp.lt.s32.totalorder %s2198_s21, %s1176_s27 }
 0x147   : > { %774 = vrot.lane.b32.xlu1 %v2071_v46, %s1271_s6  ;;  %772 = vrot.lane.b32.xlu0 %v2069_v45, %s1271_s6  ;;  %s2115_s6 = sld [smem:[#allocation9 + $0x5]] }
 0x149   : > { %v758_v56 = vstv %s2105_s30  ;;  %s1177_s30 = scalar_lea.vmem %s1176_s27, 64 }
 0x14a   : > { %p1179_p3 = scmp.lt.s32.totalorder %s1177_s30, %s1171_s20 }
 0x14b   : > { %788 = vrot.lane.b32.xlu1 %v2071_v46, %s1272_s24  ;;  %786 = vrot.lane.b32.xlu0 %v2069_v45, %s1272_s24  ;;  %s2121_s24 = sld [smem:[#allocation9 + $0x4]] }
 0x14c   : > { %p1180_p5 = por %p1179_p3, %p1178_p9 }
 0x14e   : > { %p1181_p10 = pnand %p1180_p5, %p1174_p8 }
 0x14f   : > { %802 = vrot.lane.b32.xlu1 %v2071_v46, %s1273_s25  ;;  %800 = vrot.lane.b32.xlu0 %v2069_v45, %s1273_s25  ;;  %s2124_s25 = sld [smem:[#allocation9 + $0x6]] }
 0x151   : > { %v766_v30 = vstv %s2121_s24 }
 0x153   : > { %816 = vrot.lane.b32.xlu1 %v2071_v46, %s1274_s19  ;;  %814 = vrot.lane.b32.xlu0 %v2069_v45, %s1274_s19  ;;  %s2142_s19 = sld [smem:[#allocation9 + $0x7]] }
 0x1a9   : > { %v713_v35 = vpop.permute.xlu1 %712  ;;  %v711_v47 = vpop.permute.xlu0 %710 }
 0x1aa   : > { %v714_v28 = vsel %vm2403_vm14, %v711_v47, %v713_v35  ;;  %v715_v42 = vsel %vm2404_vm9, %v713_v35, %v711_v47  ;;  %vm2407_vm14 = vnez %v2304_v2  ;;  %vm2408_vm9 = vcmp.lt.s32.totalorder %v1516_v59, 2 }
 0x1ab   : > { %v717_v63 = vmul.f32 %v716_v13, %v715_v42  ;;  %v718_v19 = vmul.f32 %v716_v13, %v714_v28 }
 0x1ad   : > { %v727_v25 = vpop.permute.xlu1 %726  ;;  %v725_v31 = vpop.permute.xlu0 %724  ;;  %v719_v41 = vsel %vm1703_vm2, %v717_v63, 0.0  ;;  %v720_v60 = vsel %vm1711_vm3, %v718_v19, 0.0  ;;  %vm2412_vm2 = vnez %v2336_v16  ;;  %vm2413_vm3 = vnez %v2339_v18 }
 0x1ae   : > { %v728_v48 = vsel %vm2401_vm1, %v725_v31, %v727_v25  ;;  %v729_v29 = vsel %vm2402_vm10, %v727_v25, %v725_v31  ;;  %vm2405_vm1 = vcmp.lt.s32.totalorder %v1516_v59, 30  ;;  %v792_v16 = vstv %s2124_s25 }
 0x1af   : > { %v731_v55 = vmul.f32 %v730_v11, %v729_v29  ;;  %v732_v36 = vmul.f32 %v730_v11, %v728_v48  ;;  %vm2406_vm10 = vmmov %vm2405_vm1  ;;  %v768_v25 = vmul.f32 %v766_v30, %v2071_v46  ;;  %v767_v31 = vmul.f32 %v766_v30, %v2069_v45 }
 0x1b1   : > { %v741_v9 = vpop.permute.xlu1 %740  ;;  %v739_v17 = vpop.permute.xlu0 %738  ;;  %v733_v57 = vsel %vm1687_vm13, %v731_v55, 0.0  ;;  %v734_v58 = vsel %vm2407_vm14, %v732_v36, 0.0  ;;  %vm2410_vm13 = vnez %v2326_v12  ;;  %v778_v12 = vstv %s2115_s6 }
 0x1b2   : > { %v742_v1 = vsel %vm2405_vm1, %v739_v17, %v741_v9  ;;  %v743_v4 = vsel %vm2406_vm10, %v741_v9, %v739_v17  ;;  %vm2409_vm1 = vmmov %vm2408_vm9  ;;  %vm2411_vm10 = vnez %v2333_v49  ;;  %v735_v7 = vadd.f32 %v733_v57, %v719_v41 }
 0x1b3   : > { %v745_v43 = vmul.f32 %v744_v53, %v743_v4  ;;  %v746_v44 = vmul.f32 %v744_v53, %v742_v1  ;;  %v736_v21 = vadd.f32 %v734_v58, %v720_v60  ;;  %vm2414_vm14 = vcmp.lt.s32.totalorder %v1516_v59, 126 }
 0x1b4   : > { %v806_v53 = vstv %s2142_s19 }
 0x1b5   : > { %v755_v20 = vpop.permute.xlu1 %754  ;;  %v753_v52 = vpop.permute.xlu0 %752  ;;  %v747_v3 = vsel %vm2410_vm13, %v745_v43, 0.0  ;;  %v748_v2 = vsel %vm2411_vm10, %v746_v44, 0.0  ;;  %vm2418_vm10 = vcmp.lt.s32.totalorder %v1516_v59, 96  ;;  %v820_v43 = vstv %s2155_s29 }
 0x1b6   : > { %v756_v6 = vsel %vm2408_vm9, %v753_v52, %v755_v20  ;;  %v757_v10 = vsel %vm2409_vm1, %v755_v20, %v753_v52  ;;  %v749_v27 = vadd.f32 %v747_v3, %v735_v7  ;;  %v750_v49 = vadd.f32 %v748_v2, %v736_v21  ;;  %vm2415_vm9 = vmmov %vm2414_vm14 }
 0x1b7   : > { %v759_v15 = vmul.f32 %v758_v56, %v757_v10  ;;  %v760_v51 = vmul.f32 %v758_v56, %v756_v6  ;;  %vm2416_vm1 = vcmp.lt.s32.totalorder %v1516_v59, 98 }
 0x1b8   : > { %vm2417_vm13 = vmmov %vm2416_vm1 }
 0x1b9   : > { %v761_v8 = vsel %vm2412_vm2, %v759_v15, 0.0  ;;  %v762_v22 = vsel %vm2413_vm3, %v760_v51, 0.0  ;;  %v775_v23 = vpop.permute.xlu1 %774  ;;  %v773_v24 = vpop.permute.xlu0 %772  ;;  %vm2419_vm2 = vmmov %vm2418_vm10 }
 0x1ba   : > { %v776_v62 = vsel %vm2414_vm14, %v773_v24, %v775_v23  ;;  %v777_v5 = vsel %vm2415_vm9, %v775_v23, %v773_v24  ;;  %v763_v33 = vadd.f32 %v761_v8, %v749_v27  ;;  %v764_v38 = vadd.f32 %v762_v22, %v750_v49 }
 0x1bb   : > { %v779_v18 = vmul.f32 %v778_v12, %v776_v62  ;;  %v780_v40 = vmul.f32 %v778_v12, %v777_v5 }
 0x1bc   : > { %v770_v28 = vadd.f32 %v768_v25, %v764_v38  ;;  %v769_v42 = vadd.f32 %v767_v31, %v763_v33 }
 0x1bd   : > { %v789_v35 = vpop.permute.xlu1 %788  ;;  %v787_v47 = vpop.permute.xlu0 %786  ;;  %v781_v55 = vsel %vm1910_vm6, %v779_v18, 0.0  ;;  %v782_v46 = vsel %vm1940_vm7, %v780_v40, 0.0 }
 0x1be   : > { %v790_v11 = vsel %vm2416_vm1, %v787_v47, %v789_v35  ;;  %v791_v48 = vsel %vm2417_vm13, %v789_v35, %v787_v47  ;;  %v783_v4 = vadd.f32 %v781_v55, %v769_v42  ;;  %v784_v37 = vadd.f32 %v782_v46, %v770_v28 }
 0x1bf   : > { %v793_v29 = vmul.f32 %v792_v16, %v790_v11  ;;  %v794_v13 = vmul.f32 %v792_v16, %v791_v48 }
 0x1c1   : > { %v803_v36 = vpop.permute.xlu1 %802  ;;  %v801_v45 = vpop.permute.xlu0 %800  ;;  %v795_v63 = vsel %vm1970_vm12, %v793_v29, 0.0  ;;  %v796_v19 = vsel %vm1994_vm8, %v794_v13, 0.0 }
 0x1c2   : > { %v804_v9 = vsel %vm2418_vm10, %v801_v45, %v803_v36  ;;  %v805_v17 = vsel %vm2419_vm2, %v803_v36, %v801_v45  ;;  %v797_v32 = vadd.f32 %v795_v63, %v783_v4  ;;  %v798_v20 = vadd.f32 %v796_v19, %v784_v37 }
 0x1c3   : > { %v807_v54 = vmul.f32 %v806_v53, %v804_v9  ;;  %v808_v1 = vmul.f32 %v806_v53, %v805_v17 }
 0x1c5   : > { %v809_v44 = vsel %vm2005_vm11, %v807_v54, 0.0  ;;  %v810_v56 = vsel %vm2017_vm5, %v808_v1, 0.0  ;;  %v817_v57 = vpop.permute.xlu1 %816  ;;  %v815_v58 = vpop.permute.xlu0 %814  ;;  %vm2420_vm11 = vnez %v2280_v39 }
 0x1c6   : > { %v818_v14 = vsel %vm687_vm4, %v815_v58, %v817_v57  ;;  %v819_v52 = vsel %vm687_vm4, %v817_v57, %v815_v58  ;;  %v811_v26 = vadd.f32 %v809_v44, %v797_v32  ;;  %v812_v6 = vadd.f32 %v810_v56, %v798_v20 }
 0x1c7   : > { %v821_v41 = vmul.f32 %v820_v43, %v818_v14  ;;  %v822_v60 = vmul.f32 %v820_v43, %v819_v52 }
 0x1c9   : > { %v823_v0 = vsel %vm2055_vm0, %v821_v41, 0.0  ;;  %v824_v10 = vsel %vm2061_vm15, %v822_v60, 0.0 }
 0x1ca   : > { %v825_v3 = vadd.f32 %v823_v0, %v811_v26  ;;  %v826_v2 = vadd.f32 %v824_v10, %v812_v6 }
 0x1cc   : > { %v829_v15 = vcombine.low %v825_v3, %v826_v2 }
 0x1ce   : > { %v836_v59 = vrot.slane %v829_v15, %v1454_v34 }
 0x1d0   : > { %v843_v51 = vrot.slane %v836_v59, %v1454_v34 }
 0x1d2   : > { %849 = vst.msk [vmem:[%s229_s28] sm:$0x3] %vm2420_vm11, %v843_v51 }
 0x1d3   : > { %1184 = shalt.err (!%p1181_p10)
}
 0x1d4   : > { %s1185_s7 = scalar_lea.hbm %s2196_s5, 32  ;;  %s1189_s25 = scalar_lea.hbm %s2250_s3, 64 }
 0x1d5   : > { %p1186_p0 = scmp.ne.s32.totalorder %s2196_s5, %s1185_s7  ;;  %p1190_p12 = scmp.lt.u32.totalorder %s2196_s5, %s2250_s3 }
 0x1d6   : > { %p1191_p7 = scmp.lt.u32.totalorder %s1189_s25, %s1185_s7  ;;  %p1193_p11 = scmp.lt.u32.totalorder %s1185_s7, %s2196_s5 }
 0x1d7   : > { %p1187_p1 = pnand %p1186_p0, %p1385_p13 }
 0x1d8   : > { %p1192_p4 = por %p1191_p7, %p1190_p12 }
 0x1d9   : > { %p1188_p2 = pneg %p1187_p1 }
 0x1da   : > { %p1194_p6 = por %p1193_p11, %p1192_p4 }
 0x1dc   : > { %p1195_p8 = pnand %p1194_p6, %p1188_p2 }
 0x1de   : > { %1198 = shalt.err (!%p1195_p8)
}
 0x1df   : > { %1028 = dma.vmem_to_hbm [thread:$0]  (%p1385_p13), %s2198_s21, 32, %s2196_s5, %s851_s15  }
 0x1e0 PF: > { %s877_s10 = sand.u32 1, %s1241_s12   ;;  %p2421_p9 = scmp.ne.s32.totalorder %s2270_s23, 0 }
 0x1e1   : > { %p2422_p3 = scmp.ge.s32.totalorder %s1261_s17, 2  ;;  %s878_s18 = scalar_lea.sflag [#allocation6], %s877_s10 }
 0x1e3   : > { %p1042_p5 = pnand %p2422_p3, %p2421_p9 }
 0x1e5   : > { %1236 = dma.done.wait (!%p1042_p5), %s878_s18, 32  }
 0x1e6   : > { %1238 = vsyncadd (!%p1042_p5), %s878_s18, 4294967264  ;;  %s21_s17 = sadd.s32 1, %s1261_s17   ;;  %s2423_s12 = smov %s1245_s13 }
 0x1e7   : > { %p18_p10 = scmp.ge.s32.totalorder %s21_s17, 4   ;;  %s2424_s13 = smov %s1249_s14 }
 0x1e8   : > { %s2425_s14 = smov %s1394_s26  ;;  %s2426_s15 = smov %s1257_s16 }
 0x1e9   : > { %s2427_s16 = smov %s2429_s9  ;;  %20 = sbr.rel (!%p18_p10) target bundleno = 8 (0x8), region = 98 }
 0x1f0   :  { %883 = vsyncpa [#allocation5], 1 }
 0x1f1   :  { %885 = vsyncpa [#allocation5 + $0x1], 1 }
 0x1f2   :  { %886 = vsyncpa [#allocation6], 1 }
 0x1f3   :  { %888 = vsyncpa [#allocation6 + $0x1], 1 }
 0x1f4   :  { %889 = vsyncpa [#allocation7], 1 }
 0x1f5   :  { %891 = vsyncpa [#allocation7 + $0x1], 1 }
 0x1f6   :  { %892 = vsyncpa [#allocation10], 1 }

</bundles_post_ra>
